<compile_context>
chip_gen: v5e
topology: v5e:2x2
jax: 0.10.0
libtpu: 0.0.40
codegen_flags: <defaults>
</compile_context>

<pallas_src>
import jax
import jax.numpy as jnp
from jax import lax
from jax.experimental import pallas as pl
from jax.experimental.pallas import tpu as pltpu


# ----------------------------------------------------------------------------
# Pallas kernel: fused 3x3 conv (stride 1, input pre-padded) + bias + ReLU
# ----------------------------------------------------------------------------
def _repvgg_fused_kernel(x_ref, w_ref, b_ref, o_ref):
    # x_ref: (1, H+2, W+2, Cin)  zero-padded NHWC image (resident across row tiles)
    # w_ref: (9, Cin, Cout)      fused 3x3 weights, taps flattened (kh*3 + kw)
    # b_ref: (1, Cout)           fused bias (f32)
    # o_ref: (1, TH, W, Cout)    output row tile
    TH = o_ref.shape[1]
    W = o_ref.shape[2]
    Cout = o_ref.shape[3]
    Cin = x_ref.shape[3]

    # First output row handled by this grid step.
    row0 = pl.multiple_of(pl.program_id(1) * TH, TH)

    bias = b_ref[...]  # (1, Cout), hoisted: added once after the matmuls

    # Single f32 accumulator for the whole (TH*W, Cout) tile; 9 MXU dots.
    acc = jnp.zeros((TH * W, Cout), jnp.float32)
    for kh in range(3):
        # (TH, W+2, Cin) slab for this filter row; kw shifts sliced in-register.
        rows = x_ref[0, pl.ds(row0 + kh, TH), :, :]
        for kw in range(3):
            patch = rows[:, kw:kw + W, :].reshape(TH * W, Cin)
            acc = acc + jnp.dot(patch, w_ref[kh * 3 + kw],
                                preferred_element_type=jnp.float32)

    out = jnp.maximum(acc + bias, 0.0)  # bias + ReLU in f32, once per tile
    # Single aggregated store of the whole output tile.
    o_ref[...] = out.reshape(1, TH, W, Cout).astype(o_ref.dtype)


def repvgg_block_pallas(x_nchw, w_hwio, bias, *, block_rows=8,
                        compute_dtype=jnp.bfloat16):
    """Fused RepVGG block forward. x_nchw: (N, Cin, H, W) float32."""
    N, Cin, H, W = x_nchw.shape
    Cout = w_hwio.shape[-1]

    # Row-tile height.  Fall back to the whole image when block_rows does not
    # divide H, and widen to the whole image when it is small enough that the
    # per-grid-step overhead would dominate.
    TH = block_rows if H % block_rows == 0 else H
    if H * W * max(Cin, Cout) * 4 <= 256 * 1024:
        TH = H

    # NCHW -> NHWC, cast to compute dtype (halves HBM traffic for bf16),
    # zero-pad spatial dims by 1 (3x3 conv, padding=1).  XLA fuses these three
    # elementwise/copy ops into one producer pass.
    x_nhwc = jnp.transpose(x_nchw, (0, 2, 3, 1)).astype(compute_dtype)
    x_pad = jnp.pad(x_nhwc, ((0, 0), (1, 1), (1, 1), (0, 0)))
    w = jnp.reshape(w_hwio.astype(compute_dtype), (9, Cin, Cout))
    b2d = bias.reshape(1, Cout).astype(jnp.float32)

    out_nhwc = pl.pallas_call(
        _repvgg_fused_kernel,
        out_shape=jax.ShapeDtypeStruct((N, H, W, Cout), jnp.float32),
        grid_spec=pltpu.PrefetchScalarGridSpec(
            num_scalar_prefetch=0,
            grid=(N, H // TH),
            in_specs=[
                # Whole padded image per batch element; same block index across
                # the row-tile axis -> stays resident, no re-DMA per tile.
                pl.BlockSpec((1, H + 2, W + 2, Cin), lambda n, t: (n, 0, 0, 0)),
                pl.BlockSpec((9, Cin, Cout), lambda n, t: (0, 0, 0)),
                pl.BlockSpec((1, Cout), lambda n, t: (0, 0)),
            ],
            out_specs=pl.BlockSpec((1, TH, W, Cout), lambda n, t: (n, t, 0, 0)),
        ),
        compiler_params=pltpu.CompilerParams(
            dimension_semantics=("parallel", "parallel"),
            vmem_limit_bytes=64 * 1024 * 1024),
    )(x_pad, w, b2d)

    return jnp.transpose(out_nhwc, (0, 3, 1, 2)).astype(x_nchw.dtype)  # NCHW


# ----------------------------------------------------------------------------
# Plain-JAX glue: parameter construction + RepVGG branch fusion (reparam math)
# ----------------------------------------------------------------------------
def _fuse_conv_bn(w_oihw, gamma, beta, mean, var, eps=1e-5):
    std = jnp.sqrt(var + eps)
    w = w_oihw * (gamma / std)[:, None, None, None]
    b = beta - mean * gamma / std
    return w, b


def make_fused_params(params):
    """Fold the three RepVGG branches into one 3x3 conv weight (HWIO) + bias."""
    C_out, C_in = params["w3"].shape[0], params["w3"].shape[1]

    w3, b3 = _fuse_conv_bn(params["w3"], *params["bn3"])
    w1, b1 = _fuse_conv_bn(params["w1"], *params["bn1"])
    w1 = jnp.pad(w1, ((0, 0), (0, 0), (1, 1), (1, 1)))  # 1x1 -> 3x3

    # identity branch -> identity 3x3 kernel, then fuse its BN
    wid = jnp.zeros((C_out, C_in, 3, 3), jnp.float32)
    wid = wid.at[jnp.arange(C_out), jnp.arange(C_out) % C_in, 1, 1].set(1.0)
    wid, bid = _fuse_conv_bn(wid, *params["bnid"])

    w = w3 + w1 + wid                        # OIHW
    b = b3 + b1 + bid
    w_hwio = jnp.transpose(w, (2, 3, 1, 0))  # OIHW -> HWIO
    return w_hwio, b


def init_params(key, in_channels, out_channels):
    ks = jax.random.split(key, 11)

    def bn_params(k, c):
        k0, k1, k2, k3 = jax.random.split(k, 4)
        gamma = jax.random.uniform(k0, (c,), jnp.float32, 0.5, 1.5)
        beta = 0.1 * jax.random.normal(k1, (c,), jnp.float32)
        mean = 0.1 * jax.random.normal(k2, (c,), jnp.float32)
        var = jax.random.uniform(k3, (c,), jnp.float32, 0.5, 1.5)
        return gamma, beta, mean, var

    return {
        "w3": 0.1 * jax.random.normal(ks[0], (out_channels, in_channels, 3, 3),
                                      jnp.float32),
        "bn3": bn_params(ks[1], out_channels),
        "w1": 0.1 * jax.random.normal(ks[2], (out_channels, in_channels, 1, 1),
                                      jnp.float32),
        "bn1": bn_params(ks[3], out_channels),
        "bnid": bn_params(ks[4], in_channels),
    }


# ----------------------------------------------------------------------------
# Reference (un-fused, branch-by-branch) in plain JAX for a correctness check
# ----------------------------------------------------------------------------
def _conv_nchw(x, w_oihw, pad):
    return lax.conv_general_dilated(
        x, w_oihw, window_strides=(1, 1), padding=[(pad, pad), (pad, pad)],
        dimension_numbers=("NCHW", "OIHW", "NCHW"))


def _bn_eval(x, gamma, beta, mean, var, eps=1e-5):
    shp = (1, -1, 1, 1)
    return (x - mean.reshape(shp)) / jnp.sqrt(var.reshape(shp) + eps) \
        * gamma.reshape(shp) + beta.reshape(shp)


def repvgg_block_reference(x, params):
    dense = _bn_eval(_conv_nchw(x, params["w3"], 1), *params["bn3"])
    one = _bn_eval(_conv_nchw(x, params["w1"], 0), *params["bn1"])
    ident = _bn_eval(x, *params["bnid"])
    return jnp.maximum(dense + one + ident, 0.0)


if __name__ == "__main__":
    key = jax.random.PRNGKey(0)
    k_x, k_p = jax.random.split(key)

    N, C, H, W = 2, 4, 16, 16          # in_channels == out_channels, stride=1
    x = jax.random.normal(k_x, (N, C, H, W), jnp.float32)

    params = init_params(k_p, C, C)
    w_hwio, bias = make_fused_params(params)

    ref = repvgg_block_reference(x, params)

    # 1) f32 compute path: tight check of the kernel + reparameterization math.
    out_f32 = jax.block_until_ready(
        repvgg_block_pallas(x, w_hwio, bias, compute_dtype=jnp.float32))
    assert out_f32.shape == ref.shape == (N, C, H, W)
    assert jnp.allclose(out_f32, ref, atol=1e-4, rtol=1e-4), (
        float(jnp.max(jnp.abs(out_f32 - ref))))

    # 2) bf16 compute path (production fast path): bf16-level tolerance.
    out_bf16 = jax.block_until_ready(
        repvgg_block_pallas(x, w_hwio, bias, compute_dtype=jnp.bfloat16))
    assert out_bf16.shape == ref.shape
    assert jnp.allclose(out_bf16, ref, atol=1e-1, rtol=1e-1), (
        float(jnp.max(jnp.abs(out_bf16 - ref))))

    print("KERNEL_OK")
</pallas_src>

<mosaic_0001>
module attributes {stable_mosaic.version = 11 : i64} {
  func.func @_repvgg_fused_kernel(%arg0: i32, %arg1: i32, %arg2: memref<1x18x18x4xf32, #tpu.memory_space<vmem>>, %arg3: memref<9x4x4xf32, #tpu.memory_space<vmem>>, %arg4: memref<1x4xf32, #tpu.memory_space<vmem>>, %arg5: memref<1x16x16x4xf32, #tpu.memory_space<vmem>>) attributes {dimension_semantics = [#tpu.dimension_semantics<parallel>, #tpu.dimension_semantics<parallel>], iteration_bounds = array<i64: 2, 1>, scalar_prefetch = 0 : i64, scratch_operands = 0 : i64, tpu.core_type = #tpu.core_type<tc>, window_params = [{transform_indices = @transform_0, window_bounds = array<i64: 1, 18, 18, 4>}, {pipeline_mode = #tpu.pipeline_mode<synchronous>, transform_indices = @transform_1, window_bounds = array<i64: 9, 4, 4>}, {pipeline_mode = #tpu.pipeline_mode<synchronous>, transform_indices = @transform_2, window_bounds = array<i64: 1, 4>}, {transform_indices = @transform_3, window_bounds = array<i64: 1, 16, 16, 4>}]} {
    %c16_i32 = arith.constant 16 : i32
    %0 = arith.muli %arg1, %c16_i32 : i32
    %1 = tpu.assume_multiple %0, 16 : i32
    %c0 = arith.constant 0 : index
    %c0_0 = arith.constant 0 : index
    %2 = vector.load %arg4[%c0, %c0_0] : memref<1x4xf32, #tpu.memory_space<vmem>>, vector<1x4xf32>
    %cst = arith.constant 0.000000e+00 : f32
    %3 = vector.broadcast %cst : f32 to vector<256x4xf32>
    %c0_i32 = arith.constant 0 : i32
    %4 = arith.addi %1, %c0_i32 : i32
    %c0_1 = arith.constant 0 : index
    %5 = arith.index_cast %4 : i32 to index
    %c0_2 = arith.constant 0 : index
    %c0_3 = arith.constant 0 : index
    %6 = vector.load %arg2[%c0_1, %5, %c0_2, %c0_3] : memref<1x18x18x4xf32, #tpu.memory_space<vmem>>, vector<1x16x18x4xf32>
    %7 = vector.shape_cast %6 : vector<1x16x18x4xf32> to vector<16x18x4xf32>
    %8 = vector.extract_strided_slice %7 {offsets = [0, 0, 0], sizes = [16, 16, 4], strides = [1, 1, 1]} : vector<16x18x4xf32> to vector<16x16x4xf32>
    %9 = vector.shape_cast %8 : vector<16x16x4xf32> to vector<256x4xf32>
    %c0_4 = arith.constant 0 : index
    %c0_5 = arith.constant 0 : index
    %c0_6 = arith.constant 0 : index
    %10 = vector.load %arg3[%c0_4, %c0_5, %c0_6] : memref<9x4x4xf32, #tpu.memory_space<vmem>>, vector<1x4x4xf32>
    %11 = vector.shape_cast %10 : vector<1x4x4xf32> to vector<4x4xf32>
    %cst_7 = arith.constant dense<0.000000e+00> : vector<256x4xf32>
    %12 = tpu.matmul %9, %11, %cst_7 {dimension_numbers = #tpu.dot_dimension_numbers<[1], [0], [0], [1], [0, 0, 1, 1], [], []>} : vector<256x4xf32>, vector<4x4xf32>, vector<256x4xf32> -> vector<256x4xf32>
    %13 = arith.addf %3, %12 : vector<256x4xf32>
    %14 = vector.extract_strided_slice %7 {offsets = [0, 1, 0], sizes = [16, 16, 4], strides = [1, 1, 1]} : vector<16x18x4xf32> to vector<16x16x4xf32>
    %15 = vector.shape_cast %14 : vector<16x16x4xf32> to vector<256x4xf32>
    %c1 = arith.constant 1 : index
    %c0_8 = arith.constant 0 : index
    %c0_9 = arith.constant 0 : index
    %16 = vector.load %arg3[%c1, %c0_8, %c0_9] : memref<9x4x4xf32, #tpu.memory_space<vmem>>, vector<1x4x4xf32>
    %17 = vector.shape_cast %16 : vector<1x4x4xf32> to vector<4x4xf32>
    %cst_10 = arith.constant dense<0.000000e+00> : vector<256x4xf32>
    %18 = tpu.matmul %15, %17, %cst_10 {dimension_numbers = #tpu.dot_dimension_numbers<[1], [0], [0], [1], [0, 0, 1, 1], [], []>} : vector<256x4xf32>, vector<4x4xf32>, vector<256x4xf32> -> vector<256x4xf32>
    %19 = arith.addf %13, %18 : vector<256x4xf32>
    %20 = vector.extract_strided_slice %7 {offsets = [0, 2, 0], sizes = [16, 16, 4], strides = [1, 1, 1]} : vector<16x18x4xf32> to vector<16x16x4xf32>
    %21 = vector.shape_cast %20 : vector<16x16x4xf32> to vector<256x4xf32>
    %c2 = arith.constant 2 : index
    %c0_11 = arith.constant 0 : index
    %c0_12 = arith.constant 0 : index
    %22 = vector.load %arg3[%c2, %c0_11, %c0_12] : memref<9x4x4xf32, #tpu.memory_space<vmem>>, vector<1x4x4xf32>
    %23 = vector.shape_cast %22 : vector<1x4x4xf32> to vector<4x4xf32>
    %cst_13 = arith.constant dense<0.000000e+00> : vector<256x4xf32>
    %24 = tpu.matmul %21, %23, %cst_13 {dimension_numbers = #tpu.dot_dimension_numbers<[1], [0], [0], [1], [0, 0, 1, 1], [], []>} : vector<256x4xf32>, vector<4x4xf32>, vector<256x4xf32> -> vector<256x4xf32>
    %25 = arith.addf %19, %24 : vector<256x4xf32>
    %c1_i32 = arith.constant 1 : i32
    %26 = arith.addi %1, %c1_i32 : i32
    %c0_14 = arith.constant 0 : index
    %27 = arith.index_cast %26 : i32 to index
    %c0_15 = arith.constant 0 : index
    %c0_16 = arith.constant 0 : index
    %28 = vector.load %arg2[%c0_14, %27, %c0_15, %c0_16] : memref<1x18x18x4xf32, #tpu.memory_space<vmem>>, vector<1x16x18x4xf32>
    %29 = vector.shape_cast %28 : vector<1x16x18x4xf32> to vector<16x18x4xf32>
    %30 = vector.extract_strided_slice %29 {offsets = [0, 0, 0], sizes = [16, 16, 4], strides = [1, 1, 1]} : vector<16x18x4xf32> to vector<16x16x4xf32>
    %31 = vector.shape_cast %30 : vector<16x16x4xf32> to vector<256x4xf32>
    %c3 = arith.constant 3 : index
    %c0_17 = arith.constant 0 : index
    %c0_18 = arith.constant 0 : index
    %32 = vector.load %arg3[%c3, %c0_17, %c0_18] : memref<9x4x4xf32, #tpu.memory_space<vmem>>, vector<1x4x4xf32>
    %33 = vector.shape_cast %32 : vector<1x4x4xf32> to vector<4x4xf32>
    %cst_19 = arith.constant dense<0.000000e+00> : vector<256x4xf32>
    %34 = tpu.matmul %31, %33, %cst_19 {dimension_numbers = #tpu.dot_dimension_numbers<[1], [0], [0], [1], [0, 0, 1, 1], [], []>} : vector<256x4xf32>, vector<4x4xf32>, vector<256x4xf32> -> vector<256x4xf32>
    %35 = arith.addf %25, %34 : vector<256x4xf32>
    %36 = vector.extract_strided_slice %29 {offsets = [0, 1, 0], sizes = [16, 16, 4], strides = [1, 1, 1]} : vector<16x18x4xf32> to vector<16x16x4xf32>
    %37 = vector.shape_cast %36 : vector<16x16x4xf32> to vector<256x4xf32>
    %c4 = arith.constant 4 : index
    %c0_20 = arith.constant 0 : index
    %c0_21 = arith.constant 0 : index
    %38 = vector.load %arg3[%c4, %c0_20, %c0_21] : memref<9x4x4xf32, #tpu.memory_space<vmem>>, vector<1x4x4xf32>
    %39 = vector.shape_cast %38 : vector<1x4x4xf32> to vector<4x4xf32>
    %cst_22 = arith.constant dense<0.000000e+00> : vector<256x4xf32>
    %40 = tpu.matmul %37, %39, %cst_22 {dimension_numbers = #tpu.dot_dimension_numbers<[1], [0], [0], [1], [0, 0, 1, 1], [], []>} : vector<256x4xf32>, vector<4x4xf32>, vector<256x4xf32> -> vector<256x4xf32>
    %41 = arith.addf %35, %40 : vector<256x4xf32>
    %42 = vector.extract_strided_slice %29 {offsets = [0, 2, 0], sizes = [16, 16, 4], strides = [1, 1, 1]} : vector<16x18x4xf32> to vector<16x16x4xf32>
    %43 = vector.shape_cast %42 : vector<16x16x4xf32> to vector<256x4xf32>
    %c5 = arith.constant 5 : index
    %c0_23 = arith.constant 0 : index
    %c0_24 = arith.constant 0 : index
    %44 = vector.load %arg3[%c5, %c0_23, %c0_24] : memref<9x4x4xf32, #tpu.memory_space<vmem>>, vector<1x4x4xf32>
    %45 = vector.shape_cast %44 : vector<1x4x4xf32> to vector<4x4xf32>
    %cst_25 = arith.constant dense<0.000000e+00> : vector<256x4xf32>
    %46 = tpu.matmul %43, %45, %cst_25 {dimension_numbers = #tpu.dot_dimension_numbers<[1], [0], [0], [1], [0, 0, 1, 1], [], []>} : vector<256x4xf32>, vector<4x4xf32>, vector<256x4xf32> -> vector<256x4xf32>
    %47 = arith.addf %41, %46 : vector<256x4xf32>
    %c2_i32 = arith.constant 2 : i32
    %48 = arith.addi %1, %c2_i32 : i32
    %c0_26 = arith.constant 0 : index
    %49 = arith.index_cast %48 : i32 to index
    %c0_27 = arith.constant 0 : index
    %c0_28 = arith.constant 0 : index
    %50 = vector.load %arg2[%c0_26, %49, %c0_27, %c0_28] : memref<1x18x18x4xf32, #tpu.memory_space<vmem>>, vector<1x16x18x4xf32>
    %51 = vector.shape_cast %50 : vector<1x16x18x4xf32> to vector<16x18x4xf32>
    %52 = vector.extract_strided_slice %51 {offsets = [0, 0, 0], sizes = [16, 16, 4], strides = [1, 1, 1]} : vector<16x18x4xf32> to vector<16x16x4xf32>
    %53 = vector.shape_cast %52 : vector<16x16x4xf32> to vector<256x4xf32>
    %c6 = arith.constant 6 : index
    %c0_29 = arith.constant 0 : index
    %c0_30 = arith.constant 0 : index
    %54 = vector.load %arg3[%c6, %c0_29, %c0_30] : memref<9x4x4xf32, #tpu.memory_space<vmem>>, vector<1x4x4xf32>
    %55 = vector.shape_cast %54 : vector<1x4x4xf32> to vector<4x4xf32>
    %cst_31 = arith.constant dense<0.000000e+00> : vector<256x4xf32>
    %56 = tpu.matmul %53, %55, %cst_31 {dimension_numbers = #tpu.dot_dimension_numbers<[1], [0], [0], [1], [0, 0, 1, 1], [], []>} : vector<256x4xf32>, vector<4x4xf32>, vector<256x4xf32> -> vector<256x4xf32>
    %57 = arith.addf %47, %56 : vector<256x4xf32>
    %58 = vector.extract_strided_slice %51 {offsets = [0, 1, 0], sizes = [16, 16, 4], strides = [1, 1, 1]} : vector<16x18x4xf32> to vector<16x16x4xf32>
    %59 = vector.shape_cast %58 : vector<16x16x4xf32> to vector<256x4xf32>
    %c7 = arith.constant 7 : index
    %c0_32 = arith.constant 0 : index
    %c0_33 = arith.constant 0 : index
    %60 = vector.load %arg3[%c7, %c0_32, %c0_33] : memref<9x4x4xf32, #tpu.memory_space<vmem>>, vector<1x4x4xf32>
    %61 = vector.shape_cast %60 : vector<1x4x4xf32> to vector<4x4xf32>
    %cst_34 = arith.constant dense<0.000000e+00> : vector<256x4xf32>
    %62 = tpu.matmul %59, %61, %cst_34 {dimension_numbers = #tpu.dot_dimension_numbers<[1], [0], [0], [1], [0, 0, 1, 1], [], []>} : vector<256x4xf32>, vector<4x4xf32>, vector<256x4xf32> -> vector<256x4xf32>
    %63 = arith.addf %57, %62 : vector<256x4xf32>
    %64 = vector.extract_strided_slice %51 {offsets = [0, 2, 0], sizes = [16, 16, 4], strides = [1, 1, 1]} : vector<16x18x4xf32> to vector<16x16x4xf32>
    %65 = vector.shape_cast %64 : vector<16x16x4xf32> to vector<256x4xf32>
    %c8 = arith.constant 8 : index
    %c0_35 = arith.constant 0 : index
    %c0_36 = arith.constant 0 : index
    %66 = vector.load %arg3[%c8, %c0_35, %c0_36] : memref<9x4x4xf32, #tpu.memory_space<vmem>>, vector<1x4x4xf32>
    %67 = vector.shape_cast %66 : vector<1x4x4xf32> to vector<4x4xf32>
    %cst_37 = arith.constant dense<0.000000e+00> : vector<256x4xf32>
    %68 = tpu.matmul %65, %67, %cst_37 {dimension_numbers = #tpu.dot_dimension_numbers<[1], [0], [0], [1], [0, 0, 1, 1], [], []>} : vector<256x4xf32>, vector<4x4xf32>, vector<256x4xf32> -> vector<256x4xf32>
    %69 = arith.addf %63, %68 : vector<256x4xf32>
    %70 = vector.broadcast %2 : vector<1x4xf32> to vector<256x4xf32>
    %71 = arith.addf %69, %70 : vector<256x4xf32>
    %cst_38 = arith.constant 0.000000e+00 : f32
    %72 = vector.broadcast %cst_38 : f32 to vector<256x4xf32>
    %73 = arith.maximumf %71, %72 : vector<256x4xf32>
    %74 = vector.shape_cast %73 : vector<256x4xf32> to vector<1x16x16x4xf32>
    %c0_39 = arith.constant 0 : index
    %c0_40 = arith.constant 0 : index
    %c0_41 = arith.constant 0 : index
    %c0_42 = arith.constant 0 : index
    %75 = vector.load %arg5[%c0_39, %c0_40, %c0_41, %c0_42] : memref<1x16x16x4xf32, #tpu.memory_space<vmem>>, vector<1x16x16x4xf32>
    tpu.vector_store %arg5[%c0_39, %c0_40, %c0_41, %c0_42], %74 {strides = array<i32>} : memref<1x16x16x4xf32, #tpu.memory_space<vmem>>, vector<1x16x16x4xf32>,
    return
  }
  func.func @transform_0(%arg0: i32, %arg1: i32) -> (i32, i32, i32, i32) {
    %c0_i32 = arith.constant 0 : i32
    %c0_i32_0 = arith.constant 0 : i32
    %c0_i32_1 = arith.constant 0 : i32
    %c0_i32_2 = arith.constant 0 : i32
    return %arg0, %c0_i32, %c0_i32_0, %c0_i32_1 : i32, i32, i32, i32
  }
  func.func @transform_1(%arg0: i32, %arg1: i32) -> (i32, i32, i32) {
    %c0_i32 = arith.constant 0 : i32
    %c0_i32_0 = arith.constant 0 : i32
    %c0_i32_1 = arith.constant 0 : i32
    %c0_i32_2 = arith.constant 0 : i32
    return %c0_i32, %c0_i32_0, %c0_i32_1 : i32, i32, i32
  }
  func.func @transform_2(%arg0: i32, %arg1: i32) -> (i32, i32) {
    %c0_i32 = arith.constant 0 : i32
    %c0_i32_0 = arith.constant 0 : i32
    %c0_i32_1 = arith.constant 0 : i32
    return %c0_i32, %c0_i32_0 : i32, i32
  }
  func.func @transform_3(%arg0: i32, %arg1: i32) -> (i32, i32, i32, i32) {
    %c0_i32 = arith.constant 0 : i32
    %c0_i32_0 = arith.constant 0 : i32
    %c0_i32_1 = arith.constant 0 : i32
    return %arg0, %arg1, %c0_i32, %c0_i32_0 : i32, i32, i32, i32
  }
}

</mosaic_0001>

<bundles_post_ra>
// kernel: tpu_custom_call.1
= control target key start
LH: loop header
LB: loop body
LE: loop exit
PB: predicated region body
PF: predicated region fallthrough
CT: control target
= control target key end

     0   :  { %s3536_s12 = smov 0   ;;  %s3538_s13 = smov 0   ;;  %s5028_s0 = inlined_call_operand.vmem [shape: f32[2,18,18,4], index: 0, kind: input, shape index: {}]   ;;  %s5029_s1 = inlined_call_operand.vmem [shape: f32[9,4,4], index: 1, kind: input, shape index: {}]   ;;  %s5030_s2 = inlined_call_operand.vmem [shape: f32[1,4], index: 2, kind: input, shape index: {}]   ;;  %s5031_s3 = inlined_call_operand.vmem [shape: f32[2,16,16,4], index: 3, kind: output, shape index: {}]  }
   0x1   :  { %s3540_s14 = smov 0  }
   0x2 LB: > { %s25_s15 = sadd.s32 1, %s3510_s13  ;;  %p3039_p0 = scmp.ge.s32.totalorder %s3514_s14, 1  ;;  %s3514_s14 = sphi %s3540_s14, %s13_s14   ;;  %s3510_s13 = sphi %s3538_s13, %s5163_s13   ;;  %s3506_s12 = sphi %s3536_s12, %s5162_s12  }
   0x3   : > { %p27_p1 = scmp.ge.s32.totalorder %s25_s15, 2  ;;  %p151_p2 = scmp.lt.s32.totalorder %s3514_s14, 3 }
   0x5   : > { %s5165_s15 = smov (%p27_p1, %s25_s15), 0  ;;  %p152_p3 = pnand %p3039_p0, %p151_p2 }
   0x7   : > { %155 = sbr.rel (%p152_p3) target bundleno = 734 (0x2de), region = 32 }
   0xc   : > { %v3043_v0 = vld [vmem:[%s5029_s1 + $0x4] sm:$0xf]  ;;  %vm445_vm0 = vcmask 1043456   ;;  %p180_p4 = scmp.lt.s32.totalorder %s3506_s12, 1  ;;  %v3110_v1 = vld [vmem:[%s5029_s1 + $0x8] sm:$0xf] }
   0xd   : > { %3447 = vmatpush.msk.msra.mxu1 %vm445_vm0, %v3043_v0  ;;  %3448 = vmatpush.msk.msra.mxu2 %vm445_vm0, %v3043_v0  ;;  %v3192_v2 = vld [vmem:[%s5029_s1 + $0xc] sm:$0xf]  ;;  %v248_v3 = vld [vmem:[%s5029_s1] sm:$0xf]  ;;  %v3226_v4 = vld [vmem:[%s5029_s1 + $0x10] sm:$0xf] }
   0xe   : > { %s5167_s12 = smov (!%p180_p4, %s3506_s12), 1  ;;  %3449 = vmatpush.msk.msra.mxu3 %vm445_vm0, %v3043_v0  ;;  %3044 = vmatpush.msk.msra.mxu0 %vm445_vm0, %v3043_v0  ;;  %vm297_vm1 = vcmask 1046528   ;;  %vm380_vm2 = vcmask 31744   ;;  %vm742_vm3 = vcmask 1045504  }
   0xf   : > { %3111 = vmatpush.msk.msrb.mxu2 %vm445_vm0, %v3110_v1  ;;  %3077 = vmatpush.msk.msrb.mxu1 %vm445_vm0, %v248_v3  ;;  %s3450_s26 = smul.u32 432, %s5167_s12  ;;  %s3446_s17 = sshll.u32 %s5167_s12, 8 }
  0x10   : > { %3193 = vmatpush.msk.msrb.mxu3 %vm445_vm0, %v3192_v2  ;;  %3227 = vmatpush.msk.msrb.mxu0 %vm445_vm0, %v3226_v4  ;;  %s4746_s20 = scalar_lea.vmem %s5031_s3, %s3446_s17 }
  0x11   : > { %s3583_s29 = scalar_lea.vmem %s5028_s0, %s3450_s26 }
  0x12   : > { %v3586_v5 = vld [vmem:[%s3583_s29 + $0x60] sm:$0xff]  ;;  %v3589_v6 = vld [vmem:[%s3583_s29 + $0x68] sm:$0xff]  ;;  %v3614_v17 = vld [vmem:[%s3583_s29 + $0x70] sm:$0x3] }
  0x13   : > { %v3592_v7 = vld [vmem:[%s3583_s29 + $0xc0] sm:$0xff]  ;;  %v318_v8 = vrot.slane %v3586_v5, 1  ;;  %v3596_v9 = vrot.slane %v3589_v6, 1  ;;  %v3599_v10 = vld [vmem:[%s3583_s29 + $0xc8] sm:$0xff]  ;;  %v3624_v20 = vld [vmem:[%s3583_s29 + $0xd0] sm:$0x3] }
  0x14   : > { %v338_v11 = vrot.slane %v3592_v7, 1  ;;  %v3603_v12 = vld [vmem:[%s3583_s29 + $0x120] sm:$0xff]  ;;  %v3606_v13 = vld [vmem:[%s3583_s29 + $0x128] sm:$0xff]  ;;  %v3609_v14 = vrot.slane %v3599_v10, 1  ;;  %v3641_v26 = vld [vmem:[%s3583_s29 + $0x130] sm:$0x3] }
  0x15   : > { %5074 = vst [vmem:[#allocation2_spill] sm:$0xff] %v3603_v12  ;;  %v5032_v15 = vrot.slane %v3603_v12, 1  ;;  %v359_v16 = vrot.slane %v3606_v13, 1  ;;  %v3617_v18 = vld [vmem:[%s3583_s29] sm:$0xff]  ;;  %v3621_v19 = vsel %vm297_vm1, %v318_v8, %v3596_v9  ;;  %v3627_v21 = vld [vmem:[%s3583_s29 + $0x8] sm:$0xff]  ;;  %v321_v27 = vrot.slane %v3614_v17, 1 }
  0x16   : > { %5075 = vst [vmem:[#allocation3_spill] sm:$0xff] %v3606_v13  ;;  %v298_v22 = vrot.slane %v3617_v18, 1  ;;  %3053 = vmatmul.msk.f32.vlgmr.msra.gmra.mxu1 %vm380_vm2, %v3621_v19  ;;  %v3634_v23 = vsel %vm297_vm1, %v338_v11, %v3609_v14  ;;  %v299_v25 = vrot.slane %v3627_v21, 1  ;;  %v3648_v28 = vld [vmem:[%s3583_s29 + $0x10] sm:$0x3]  ;;  %v341_v29 = vrot.slane %v3624_v20, 1 }
  0x17   : > { %v360_v24 = vsel %vm297_vm1, %v5032_v15, %v359_v16  ;;  %5076 = vst [vmem:[#allocation4_spill] sm:$0xff] %v3641_v26  ;;  %3061 = vmatmul.msk.f32.vlgmr.msra.gmra.mxu2 %vm380_vm2, %v3634_v23  ;;  %v361_v31 = vrot.slane %v3641_v26, 1  ;;  %v301_v32 = vrot.slane %v3648_v28, 1  ;;  %v322_v33 = vsel %vm297_vm1, %v3596_v9, %v321_v27  ;;  %v3661_v36 = vld [vmem:[%s3583_s29 + $0x78] sm:$0xff]  ;;  %v3664_v37 = vld [vmem:[%s3583_s29 + $0x80] sm:$0xff]  ;;  %v3752_v4 = vld [vmem:[%s3583_s29 + $0x90] sm:$0xff] }
  0x18   : > { %3069 = vmatmul.msk.f32.vlgmr.msra.gmra.mxu3 %vm380_vm2, %v360_v24  ;;  %v300_v30 = vsel %vm297_vm1, %v298_v22, %v299_v25  ;;  %v342_v34 = vsel %vm297_vm1, %v3609_v14, %v341_v29  ;;  %v3667_v38 = vld [vmem:[%s3583_s29 + $0xd8] sm:$0xff]  ;;  %v3670_v39 = vld [vmem:[%s3583_s29 + $0xe0] sm:$0xff]  ;;  %v323_v43 = vrot.slane %v3661_v36, 1  ;;  %v3684_v44 = vrot.slane %v3664_v37, 1  ;;  %v3718_v56 = vld [vmem:[%s3583_s29 + $0x88] sm:$0x3] }
  0x19   : > { %3045 = vmatmul.msk.f32.vlgmr.msra.gmra.mxu0 %vm380_vm2, %v300_v30  ;;  %v362_v35 = vsel %vm297_vm1, %v359_v16, %v361_v31  ;;  %v3673_v40 = vld [vmem:[%s3583_s29 + $0x138] sm:$0xff]  ;;  %v3676_v41 = vld [vmem:[%s3583_s29 + $0x140] sm:$0xff]  ;;  %v302_v42 = vsel %vm297_vm1, %v299_v25, %v301_v32  ;;  %v343_v47 = vrot.slane %v3667_v38, 1  ;;  %v3694_v48 = vrot.slane %v3670_v39, 1  ;;  %v3721_v57 = vld [vmem:[%s3583_s29 + $0xe8] sm:$0x3] }
  0x1a   : > { %5077 = vst [vmem:[#allocation5_spill] sm:$0xff] %v3673_v40  ;;  %v3687_v45 = vld [vmem:[%s3583_s29 + $0x18] sm:$0xff]  ;;  %v3690_v46 = vld [vmem:[%s3583_s29 + $0x20] sm:$0xff]  ;;  %v363_v49 = vrot.slane %v3673_v40, 1  ;;  %v3698_v50 = vrot.slane %v3676_v41, 1  ;;  %v3707_v53 = vsel %vm297_vm1, %v323_v43, %v3684_v44  ;;  %v326_v60 = vrot.slane %v3718_v56, 1 }
  0x1b   : > { %5078 = vst [vmem:[#allocation6_spill] sm:$0xff] %v3676_v41  ;;  %v303_v51 = vrot.slane %v3687_v45, 1  ;;  %v3703_v52 = vrot.slane %v3690_v46, 1  ;;  %v3711_v54 = vsel %vm297_vm1, %v343_v47, %v3694_v48  ;;  %v3724_v58 = vld [vmem:[%s3583_s29 + $0x148] sm:$0x3]  ;;  %v346_v62 = vrot.slane %v3721_v57, 1 }
  0x1c   : > { %5079 = vst [vmem:[#allocation7_spill] sm:$0xff] %v3698_v50  ;;  %v3715_v55 = vsel %vm297_vm1, %v363_v49, %v3698_v50  ;;  %v3738_v61 = vld [vmem:[%s3583_s29 + $0x28] sm:$0x3]  ;;  %v366_v63 = vrot.slane %v3724_v58, 1  ;;  %v327_v1 = vsel %vm297_vm1, %v3684_v44, %v326_v60  ;;  %v3755_v8 = vld [vmem:[%s3583_s29 + $0x98] sm:$0xff]  ;;  %v3758_v11 = vld [vmem:[%s3583_s29 + $0xf0] sm:$0xff] }
  0x1d   : > { %5080 = vst [vmem:[#allocation8_spill] sm:$0xff] %v3715_v55  ;;  %v3730_v59 = vsel %vm297_vm1, %v303_v51, %v3703_v52  ;;  %v306_v0 = vrot.slane %v3738_v61, 1  ;;  %v347_v2 = vsel %vm297_vm1, %v3694_v48, %v346_v62  ;;  %v3761_v16 = vld [vmem:[%s3583_s29 + $0xf8] sm:$0xff]  ;;  %v3764_v22 = vld [vmem:[%s3583_s29 + $0x150] sm:$0xff]  ;;  %v328_v27 = vrot.slane %v3752_v4, 1 }
  0x1e   : > { %3054 = vmatmul.msk.f32.gmra.mxu1 %vm380_vm2, %v322_v33  ;;  %5081 = vst [vmem:[#allocation9_spill] sm:$0xff] %v3724_v58  ;;  %v367_v3 = vsel %vm297_vm1, %v3698_v50, %v366_v63  ;;  %v3767_v24 = vld [vmem:[%s3583_s29 + $0x158] sm:$0xff]  ;;  %v3776_v29 = vrot.slane %v3755_v8, 1  ;;  %v3779_v30 = vld [vmem:[%s3583_s29 + $0x30] sm:$0xff]  ;;  %v348_v32 = vrot.slane %v3758_v11, 1  ;;  %v3786_v33 = vrot.slane %v3761_v16, 1 }
  0x1f   : > { %3062 = vmatmul.msk.f32.gmra.mxu2 %vm380_vm2, %v342_v34  ;;  %5082 = vst [vmem:[#allocation10_spill] sm:$0xff] %v3764_v22  ;;  %v307_v25 = vsel %vm297_vm1, %v3703_v52, %v306_v0  ;;  %v3782_v31 = vld [vmem:[%s3583_s29 + $0x38] sm:$0xff]  ;;  %v368_v34 = vrot.slane %v3764_v22, 1  ;;  %v3802_v49 = vld [vmem:[%s3583_s29 + $0xa0] sm:$0x3]  ;;  %v3868_v58 = vld [vmem:[%s3583_s29 + $0x168] sm:$0xff] }
  0x20   : > { %3070 = vmatmul.msk.f32.gmra.mxu3 %vm380_vm2, %v362_v35  ;;  %5083 = vst [vmem:[#allocation11_spill] sm:$0xff] %v3767_v24  ;;  %v3790_v35 = vrot.slane %v3767_v24, 1  ;;  %v3795_v43 = vrot.slane %v3782_v31, 1  ;;  %v3799_v47 = vsel %vm297_vm1, %v328_v27, %v3776_v29  ;;  %v3806_v51 = vsel %vm297_vm1, %v348_v32, %v3786_v33  ;;  %v3813_v62 = vld [vmem:[%s3583_s29 + $0x100] sm:$0x3]  ;;  %v3859_v24 = vld [vmem:[%s3583_s29 + $0xb0] sm:$0xff] }
  0x21   : > { %3046 = vmatmul.msk.f32.gmra.mxu0 %vm380_vm2, %v302_v42  ;;  %v308_v42 = vrot.slane %v3779_v30, 1  ;;  %5086 = vst [vmem:[#allocation14_spill] sm:$0xff] %v3813_v62  ;;  %v3816_v63 = vld [vmem:[%s3583_s29 + $0x160] sm:$0x3]  ;;  %v331_v0 = vrot.slane %v3802_v49, 1  ;;  %v351_v27 = vrot.slane %v3813_v62, 1 }
  0x22   : > { %5084 = vst [vmem:[#allocation12_spill] sm:$0xff] %v3790_v35  ;;  %v3810_v60 = vsel %vm297_vm1, %v368_v34, %v3790_v35  ;;  %v371_v32 = vrot.slane %v3816_v63, 1  ;;  %v3260_v34 = vld [vmem:[%s5029_s1 + $0x14] sm:$0xf]  ;;  %v3924_v13 = vld [vmem:[%s3583_s29 + $0x178] sm:$0x3] }
  0x23   : > { %5085 = vst [vmem:[#allocation13_spill] sm:$0xff] %v3810_v60  ;;  %3261 = vmatpush.msk.msra.mxu1 %vm445_vm0, %v3260_v34  ;;  %v332_v15 = vsel %vm297_vm1, %v3776_v29, %v331_v0  ;;  %v3865_v34 = vld [vmem:[%s3583_s29 + $0x110] sm:$0xff] }
  0x24   : > { %5087 = vst [vmem:[#allocation15_spill] sm:$0xff] %v3816_v63  ;;  %v3856_v63 = vld [vmem:[%s3583_s29 + $0xa8] sm:$0xff]  ;;  %v3871_v22 = vld [vmem:[%s3583_s29 + $0x170] sm:$0xff] }
  0x25   : > { %5089 = vst [vmem:[#allocation17_spill] sm:$0xff] %v3865_v34  ;;  %v3886_v41 = vld [vmem:[%s3583_s29 + $0x50] sm:$0xff]  ;;  %v3897_v50 = vrot.slane %v3871_v22, 1 }
  0x26   : > { %3055 = vmatmul.msk.f32.gmra.mxu1 %vm380_vm2, %v3707_v53  ;;  %5090 = vst [vmem:[#allocation18_spill] sm:$0xff] %v3868_v58  ;;  %v3903_v26 = vrot.slane %v3886_v41, 1 }
  0x27   : > { %3063 = vmatmul.msk.f32.gmra.mxu2 %vm380_vm2, %v3711_v54  ;;  %5091 = vst [vmem:[#allocation19_spill] sm:$0xff] %v3871_v22 }
  0x28   : > { %3071 = vmatmul.msk.f32.gmra.mxu3 %vm380_vm2, %v3715_v55  ;;  %5095 = vst [vmem:[#allocation23_spill] sm:$0xff] %v3924_v13 }
  0x29   : > { %3047 = vmatmul.msk.f32.gmra.mxu0 %vm380_vm2, %v3730_v59 }
  0x2e   : > { %3056 = vmatmul.msk.f32.gmra.mxu1 %vm380_vm2, %v327_v1  ;;  %v3823_v1 = vsel %vm297_vm1, %v308_v42, %v3795_v43 }
  0x2f   : > { %3064 = vmatmul.msk.f32.gmra.mxu2 %vm380_vm2, %v347_v2  ;;  %v3830_v2 = vld [vmem:[%s3583_s29 + $0x40] sm:$0x3] }
  0x30   : > { %3072 = vmatmul.msk.f32.gmra.mxu3 %vm380_vm2, %v367_v3  ;;  %v3342_v3 = vld [vmem:[%s5029_s1 + $0x18] sm:$0xf]  ;;  %v311_v42 = vrot.slane %v3830_v2, 1 }
  0x31   : > { %3048 = vmatmul.msk.f32.gmra.mxu0 %vm380_vm2, %v307_v25  ;;  %v3376_v25 = vld [vmem:[%s5029_s1 + $0x1c] sm:$0xf]  ;;  %3343 = vmatpush.msk.msra.mxu2 %vm445_vm0, %v3342_v3  ;;  %v352_v3 = vsel %vm297_vm1, %v3786_v33, %v351_v27  ;;  %v333_v27 = vrot.slane %v3856_v63, 1 }
  0x32   : > { %3377 = vmatpush.msk.msra.mxu3 %vm445_vm0, %v3376_v25  ;;  %v372_v25 = vsel %vm297_vm1, %v3790_v35, %v371_v32  ;;  %v312_v0 = vsel %vm297_vm1, %v3795_v43, %v311_v42  ;;  %v3880_v32 = vrot.slane %v3859_v24, 1  ;;  %v3883_v35 = vld [vmem:[%s3583_s29 + $0x48] sm:$0xff] }
  0x33   : > { %v313_v55 = vrot.slane %v3883_v35, 1 }
  0x34   : > { %v3907_v40 = vsel %vm297_vm1, %v333_v27, %v3880_v32 }
  0x35   : > { %v315_v27 = vsel %vm297_vm1, %v313_v55, %v3903_v26 }
  0x36   : > { %3057 = vmatmul.msk.f32.gmra.mxu1 %vm380_vm2, %v3799_v47 }
  0x37   : > { %3065 = vmatmul.msk.f32.gmra.mxu2 %vm380_vm2, %v3806_v51 }
  0x38   : > { %3073 = vmatmul.msk.f32.gmra.mxu3 %vm380_vm2, %v3810_v60  ;;  %v3862_v60 = vld [vmem:[%s3583_s29 + $0x108] sm:$0xff] }
  0x39   : > { %3049 = vmatmul.msk.f32.gmra.mxu0 %vm380_vm2, %v3823_v1  ;;  %5088 = vst [vmem:[#allocation16_spill] sm:$0xff] %v3862_v60  ;;  %v353_v42 = vrot.slane %v3862_v60, 1  ;;  %v744_v60 = vrot.slane %v3627_v21, 2 }
  0x3e   : > { %3058 = vmatmul.msk.f32.gmra.mxu1 %vm380_vm2, %v332_v15  ;;  %v3410_v15 = vld [vmem:[%s5029_s1 + $0x20] sm:$0xf] }
  0x3f   : > { %3066 = vmatmul.msk.f32.gmra.mxu2 %vm380_vm2, %v352_v3  ;;  %v3893_v3 = vrot.slane %v3865_v34, 1  ;;  %3411 = vmatpush.msk.msra.mxu0 %vm445_vm0, %v3410_v15  ;;  %v3918_v15 = vld [vmem:[%s3583_s29 + $0xb8] sm:$0x3]  ;;  %v376_v34 = vrot.slane %v3924_v13, 1  ;;  %v743_v13 = vrot.slane %v3617_v18, 2 }
  0x40   : > { %3074 = vmatmul.msk.f32.gmra.mxu3 %vm380_vm2, %v372_v25  ;;  %v373_v25 = vrot.slane %v3868_v58, 1 }
  0x41   : > { %3050 = vmatmul.msk.f32.gmra.mxu0 %vm380_vm2, %v312_v0  ;;  %v3911_v58 = vsel %vm297_vm1, %v353_v42, %v3893_v3  ;;  %v3921_v0 = vld [vmem:[%s3583_s29 + $0x118] sm:$0x3]  ;;  %v336_v42 = vrot.slane %v3918_v15, 1 }
  0x42   : > { %5092 = vst [vmem:[#allocation20_spill] sm:$0xff] %v3911_v58  ;;  %v3915_v22 = vsel %vm297_vm1, %v373_v25, %v3897_v50  ;;  %v3936_v25 = vld [vmem:[%s3583_s29 + $0x58] sm:$0x3]  ;;  %v356_v12 = vrot.slane %v3921_v0, 1 }
  0x43   : > { %5093 = vst [vmem:[#allocation21_spill] sm:$0xff] %v3915_v22  ;;  %v316_v62 = vrot.slane %v3936_v25, 1  ;;  %v337_v55 = vsel %vm297_vm1, %v3880_v32, %v336_v42 }
  0x44   : > { %5094 = vst [vmem:[#allocation22_spill] sm:$0xff] %v3921_v0 }
  0x45   : > { %v317_v0 = vsel %vm297_vm1, %v3903_v26, %v316_v62 }
  0x46   : > { %3059 = vmatmul.msk.f32.gmra.mxu1 %vm380_vm2, %v3907_v40 }
  0x47   : > { %3067 = vmatmul.msk.f32.gmra.mxu2 %vm380_vm2, %v3911_v58  ;;  %v357_v58 = vsel %vm297_vm1, %v3893_v3, %v356_v12  ;;  %v745_v12 = vsel %vm742_vm3, %v743_v13, %v744_v60 }
  0x48   : > { %3075 = vmatmul.msk.f32.gmra.mxu3 %vm380_vm2, %v3915_v22  ;;  %v377_v22 = vsel %vm297_vm1, %v3897_v50, %v376_v34  ;;  %v3979_v34 = vrot.slane %v3690_v46, 2 }
  0x49   : > { %3051 = vmatmul.msk.f32.gmra.mxu0 %vm380_vm2, %v315_v27 }
  0x4e   : > { %3060 = vmatmul.msk.f32.gmra.mxu1 %vm380_vm2, %v337_v55 }
  0x4f   : > { %3068 = vmatmul.msk.f32.gmra.mxu2 %vm380_vm2, %v357_v58  ;;  %v3963_v58 = vld [vmem:[%s3583_s29 + $0x28] sm:$0x3] }
  0x50   : > { %3076 = vmatmul.msk.f32.gmra.mxu3 %vm380_vm2, %v377_v22  ;;  %v746_v22 = vrot.slane %v3648_v28, 2  ;;  %v1353_v62 = vrot.slane %v3963_v58, 1  ;;  %v1644_v28 = vrot.slane %v3687_v45, 2 }
  0x51   : > { %3052 = vmatmul.msk.f32.gmra.mxu0 %vm380_vm2, %v317_v0 }
  0x52   : > { %v747_v13 = vsel %vm742_vm3, %v744_v60, %v746_v22 }
  0x56   : > { %3078 = vmatmul.msk.f32.vlgmr.msrb.gmra.mxu1 %vm380_vm2, %v3617_v18  ;;  %v1354_v18 = vsel %vm297_vm1, %v3703_v52, %v1353_v62  ;;  %v751_v52 = vrot.slane %v3738_v61, 2  ;;  %v1649_v61 = vrot.slane %v3779_v30, 2 }
  0x57   : > { %3112 = vmatmul.msk.f32.vlgmr.msrb.gmra.mxu2 %vm380_vm2, %v745_v12 }
  0x58   : > { %3194 = vmatmul.msk.f32.vlgmr.msrb.gmra.mxu3 %vm380_vm2, %v3687_v45  ;;  %v752_v0 = vsel %vm742_vm3, %v3979_v34, %v751_v52  ;;  %v766_v52 = vrot.slane %v3614_v17, 2 }
  0x59   : > { %3228 = vmatmul.msk.f32.vlgmr.msrb.gmra.mxu0 %vm380_vm2, %v3730_v59  ;;  %v3984_v59 = vsel %vm742_vm3, %v1644_v28, %v3979_v34  ;;  %v3158_v28 = vld [vmem:[%s3583_s29 + $0x88] sm:$0x3] }
  0x5e   : > { %3079 = vmatmul.msk.f32.gmra.mxu1 %vm380_vm2, %v3627_v21  ;;  %v3993_v21 = vld [vmem:[%s3583_s29 + $0x40] sm:$0x3] }
  0x5f   : > { %3113 = vmatmul.msk.f32.gmra.mxu2 %vm380_vm2, %v747_v13  ;;  %v1358_v60 = vrot.slane %v3993_v21, 1 }
  0x60   : > { %3195 = vmatmul.msk.f32.gmra.mxu3 %vm380_vm2, %v3690_v46 }
  0x61   : > { %3229 = vmatmul.msk.f32.gmra.mxu0 %vm380_vm2, %v1354_v18 }
  0x66   : > { %3080 = vmatmul.msk.f32.gmra.mxu1 %vm380_vm2, %v3687_v45  ;;  %v1359_v45 = vsel %vm297_vm1, %v3795_v43, %v1358_v60  ;;  %v756_v43 = vrot.slane %v3830_v2, 2  ;;  %v1654_v2 = vrot.slane %v3883_v35, 2 }
  0x67   : > { %3114 = vmatmul.msk.f32.gmra.mxu2 %vm380_vm2, %v3984_v59 }
  0x68   : > { %3196 = vmatmul.msk.f32.gmra.mxu3 %vm380_vm2, %v3779_v30 }
  0x69   : > { %3230 = vmatmul.msk.f32.gmra.mxu0 %vm380_vm2, %v3823_v1  ;;  %v4010_v1 = vrot.slane %v3782_v31, 2 }
  0x6b   : > { %v4015_v42 = vsel %vm742_vm3, %v1649_v61, %v4010_v1  ;;  %v757_v12 = vsel %vm742_vm3, %v4010_v1, %v756_v43 }
  0x6e   : > { %3081 = vmatmul.msk.f32.gmra.mxu1 %vm380_vm2, %v3690_v46  ;;  %v4024_v46 = vld [vmem:[%s3583_s29 + $0x58] sm:$0x3] }
  0x6f   : > { %3115 = vmatmul.msk.f32.gmra.mxu2 %vm380_vm2, %v752_v0  ;;  %v1363_v55 = vrot.slane %v4024_v46, 1 }
  0x70   : > { %3197 = vmatmul.msk.f32.gmra.mxu3 %vm380_vm2, %v3782_v31 }
  0x71   : > { %3231 = vmatmul.msk.f32.gmra.mxu0 %vm380_vm2, %v1359_v45  ;;  %v1373_v45 = vrot.slane %v3158_v28, 1 }
  0x73   : > { %v1374_v17 = vsel %vm297_vm1, %v3684_v44, %v1373_v45  ;;  %v4155_v45 = vrot.slane %v3755_v8, 2 }
  0x75   : > { %5100 = vst [vmem:[#allocation28_spill] sm:$0xff] %v4155_v45 }
  0x76   : > { %3082 = vmatmul.msk.f32.gmra.mxu1 %vm380_vm2, %v3779_v30  ;;  %v1364_v30 = vsel %vm297_vm1, %v3903_v26, %v1363_v55  ;;  %v4054_v26 = vld [vmem:[%s3583_s29 + $0x70] sm:$0x3]  ;;  %v4111_v55 = vrot.slane %v3664_v37, 2 }
  0x77   : > { %3116 = vmatmul.msk.f32.gmra.mxu2 %vm380_vm2, %v4015_v42  ;;  %v1368_v62 = vrot.slane %v4054_v26, 1 }
  0x78   : > { %3198 = vmatmul.msk.f32.gmra.mxu3 %vm380_vm2, %v3883_v35  ;;  %5097 = vst [vmem:[#allocation25_spill] sm:$0xff] %v4111_v55 }
  0x79   : > { %3232 = vmatmul.msk.f32.gmra.mxu0 %vm380_vm2, %v315_v27  ;;  %v4040_v27 = vrot.slane %v3886_v41, 2 }
  0x7b   : > { %v4045_v22 = vsel %vm742_vm3, %v1654_v2, %v4040_v27 }
  0x7e   : > { %3083 = vmatmul.msk.f32.gmra.mxu1 %vm380_vm2, %v3782_v31  ;;  %v761_v31 = vrot.slane %v3936_v25, 2  ;;  %v1659_v25 = vrot.slane %v3586_v5, 2 }
  0x7f   : > { %3117 = vmatmul.msk.f32.gmra.mxu2 %vm380_vm2, %v757_v12 }
  0x80   : > { %3199 = vmatmul.msk.f32.gmra.mxu3 %vm380_vm2, %v3886_v41  ;;  %v762_v13 = vsel %vm742_vm3, %v4040_v27, %v761_v31  ;;  %v3161_v31 = vld [vmem:[%s3583_s29 + $0xa0] sm:$0x3] }
  0x81   : > { %3233 = vmatmul.msk.f32.gmra.mxu0 %vm380_vm2, %v1364_v30 }
  0x86   : > { %3084 = vmatmul.msk.f32.gmra.mxu1 %vm380_vm2, %v3883_v35  ;;  %v1369_v35 = vsel %vm297_vm1, %v3596_v9, %v1368_v62  ;;  %v771_v62 = vrot.slane %v3718_v56, 2 }
  0x87   : > { %3118 = vmatmul.msk.f32.gmra.mxu2 %vm380_vm2, %v4045_v22 }
  0x88   : > { %3200 = vmatmul.msk.f32.gmra.mxu3 %vm380_vm2, %v3586_v5  ;;  %v772_v28 = vsel %vm742_vm3, %v4111_v55, %v771_v62  ;;  %v776_v62 = vrot.slane %v3802_v49, 2 }
  0x89   : > { %3234 = vmatmul.msk.f32.gmra.mxu0 %vm380_vm2, %v3621_v19  ;;  %v4071_v19 = vrot.slane %v3589_v6, 2 }
  0x8b   : > { %v767_v61 = vsel %vm742_vm3, %v4071_v19, %v766_v52 }
  0x8e   : > { %3085 = vmatmul.msk.f32.gmra.mxu1 %vm380_vm2, %v3886_v41  ;;  %v4078_v41 = vsel %vm742_vm3, %v1659_v25, %v4071_v19  ;;  %v1378_v25 = vrot.slane %v3161_v31, 1  ;;  %v3164_v31 = vld [vmem:[%s3583_s29 + $0xb8] sm:$0x3] }
  0x8f   : > { %3119 = vmatmul.msk.f32.gmra.mxu2 %vm380_vm2, %v762_v13 }
  0x90   : > { %3201 = vmatmul.msk.f32.gmra.mxu3 %vm380_vm2, %v3589_v6  ;;  %v1379_v56 = vsel %vm297_vm1, %v3776_v29, %v1378_v25 }
  0x91   : > { %3235 = vmatmul.msk.f32.gmra.mxu0 %vm380_vm2, %v1369_v35 }
  0x93   : > { %v4074_v18 = vpop.f32.mrf.mxu1 }
  0x96   : > { %3086 = vmatmul.msk.f32.gmra.mxu1 %vm380_vm2, %v3586_v5  ;;  %v4082_v9 = vpop.f32.mrf.mxu0 }
  0x97   : > { %3120 = vmatmul.msk.f32.gmra.mxu2 %vm380_vm2, %v4078_v41 }
  0x98   : > { %3202 = vmatmul.msk.f32.gmra.mxu3 %vm380_vm2, %v3661_v36 }
  0x99   : > { %3236 = vmatmul.msk.f32.gmra.mxu0 %vm380_vm2, %v3707_v53  ;;  %v1664_v53 = vrot.slane %v3661_v36, 2 }
  0x9a   : > { %v4092_v60 = vpop.f32.mrf.mxu2 }
  0x9b   : > { %v4094_v0 = vpop.f32.mrf.mxu3  ;;  %v4096_v5 = vpop.f32.mrf.mxu1  ;;  %v4122_v44 = vsel %vm742_vm3, %v1664_v53, %v4111_v55 }
  0x9c   : > { %5096 = vst [vmem:[#allocation24_spill] sm:$0xff] %v4094_v0 }
  0x9e   : > { %3087 = vmatmul.msk.f32.gmra.mxu1 %vm380_vm2, %v3589_v6  ;;  %v4102_v43 = vpop.f32.mrf.mxu0 }
  0x9f   : > { %3121 = vmatmul.msk.f32.gmra.mxu2 %vm380_vm2, %v767_v61 }
  0xa0   : > { %3203 = vmatmul.msk.f32.gmra.mxu3 %vm380_vm2, %v3664_v37 }
  0xa1   : > { %3237 = vmatmul.msk.f32.gmra.mxu0 %vm380_vm2, %v1374_v17 }
  0xa2   : > { %v4114_v12 = vpop.f32.mrf.mxu2 }
  0xa3   : > { %v4116_v6 = vpop.f32.mrf.mxu3  ;;  %v4118_v30 = vpop.f32.mrf.mxu1 }
  0xa4   : > { %5098 = vst [vmem:[#allocation26_spill] sm:$0xff] %v4116_v6 }
  0xa6   : > { %3088 = vmatmul.msk.f32.gmra.mxu1 %vm380_vm2, %v3661_v36  ;;  %v4126_v2 = vpop.f32.mrf.mxu0 }
  0xa7   : > { %3122 = vmatmul.msk.f32.gmra.mxu2 %vm380_vm2, %v4122_v44 }
  0xa8   : > { %3204 = vmatmul.msk.f32.gmra.mxu3 %vm380_vm2, %v3752_v4 }
  0xa9   : > { %3238 = vmatmul.msk.f32.gmra.mxu0 %vm380_vm2, %v3799_v47  ;;  %v1669_v47 = vrot.slane %v3752_v4, 2 }
  0xaa   : > { %v4136_v13 = vpop.f32.mrf.mxu2 }
  0xab   : > { %v4138_v35 = vpop.f32.mrf.mxu3  ;;  %v4140_v36 = vpop.f32.mrf.mxu1  ;;  %v4166_v29 = vsel %vm742_vm3, %v1669_v47, %v4155_v45  ;;  %v777_v47 = vsel %vm742_vm3, %v4155_v45, %v776_v62 }
  0xac   : > { %5099 = vst [vmem:[#allocation27_spill] sm:$0xff] %v4138_v35 }
  0xad   : > { %5102 = vst [vmem:[#allocation30_spill] sm:$0xff] %v4166_v29 }
  0xae   : > { %3089 = vmatmul.msk.f32.gmra.mxu1 %vm380_vm2, %v3664_v37  ;;  %v4146_v52 = vpop.f32.mrf.mxu0 }
  0xaf   : > { %3123 = vmatmul.msk.f32.gmra.mxu2 %vm380_vm2, %v772_v28 }
  0xb0   : > { %3205 = vmatmul.msk.f32.gmra.mxu3 %vm380_vm2, %v3755_v8 }
  0xb1   : > { %3239 = vmatmul.msk.f32.gmra.mxu0 %vm380_vm2, %v1379_v56  ;;  %v1383_v56 = vrot.slane %v3164_v31, 1  ;;  %v4199_v31 = vrot.slane %v3859_v24, 2 }
  0xb2   : > { %v4158_v61 = vpop.f32.mrf.mxu2 }
  0xb3   : > { %v4160_v37 = vpop.f32.mrf.mxu3  ;;  %v4162_v17 = vpop.f32.mrf.mxu1  ;;  %v1384_v49 = vsel %vm297_vm1, %v3880_v32, %v1383_v56  ;;  %5104 = vst [vmem:[#allocation32_spill] sm:$0xff] %v4199_v31 }
  0xb4   : > { %5101 = vst [vmem:[#allocation29_spill] sm:$0xff] %v4160_v37 }
  0xb6   : > { %3090 = vmatmul.msk.f32.gmra.mxu1 %vm380_vm2, %v3752_v4  ;;  %v4170_v53 = vpop.f32.mrf.mxu0 }
  0xb7   : > { %3124 = vmatmul.msk.f32.gmra.mxu2 %vm380_vm2, %v4166_v29 }
  0xb8   : > { %3206 = vmatmul.msk.f32.gmra.mxu3 %vm380_vm2, %v3856_v63 }
  0xb9   : > { %3240 = vmatmul.msk.f32.gmra.mxu0 %vm380_vm2, %v3907_v40  ;;  %v1674_v40 = vrot.slane %v3856_v63, 2 }
  0xba   : > { %v4180_v25 = vpop.f32.mrf.mxu2 }
  0xbb   : > { %v4182_v28 = vpop.f32.mrf.mxu3  ;;  %v4184_v4 = vpop.f32.mrf.mxu1  ;;  %v4210_v32 = vsel %vm742_vm3, %v1674_v40, %v4199_v31 }
  0xbc   : > { %5103 = vst [vmem:[#allocation31_spill] sm:$0xff] %v4182_v28 }
  0xbd   : > { %5106 = vst [vmem:[#allocation34_spill] sm:$0xff] %v4210_v32 }
  0xbe   : > { %3091 = vmatmul.msk.f32.gmra.mxu1 %vm380_vm2, %v3755_v8  ;;  %v4190_v37 = vpop.f32.mrf.mxu0 }
  0xbf   : > { %3125 = vmatmul.msk.f32.gmra.mxu2 %vm380_vm2, %v777_v47  ;;  %v3167_v47 = vld [vmem:[%s3583_s29 + $0xd0] sm:$0x3] }
  0xc0   : > { %3207 = vmatmul.msk.f32.gmra.mxu3 %vm380_vm2, %v3859_v24  ;;  %v1388_v45 = vrot.slane %v3167_v47, 1  ;;  %v4243_v47 = vrot.slane %v3599_v10, 2 }
  0xc1   : > { %3241 = vmatmul.msk.f32.gmra.mxu0 %vm380_vm2, %v1384_v49  ;;  %v781_v49 = vrot.slane %v3918_v15, 2 }
  0xc2   : > { %v4202_v62 = vpop.f32.mrf.mxu2  ;;  %v1389_v15 = vsel %vm297_vm1, %v3609_v14, %v1388_v45  ;;  %v3170_v45 = vld [vmem:[%s3583_s29 + $0xe8] sm:$0x3] }
  0xc3   : > { %v4204_v8 = vpop.f32.mrf.mxu3  ;;  %v4206_v28 = vpop.f32.mrf.mxu1  ;;  %v782_v35 = vsel %vm742_vm3, %v4199_v31, %v781_v49  ;;  %v1393_v29 = vrot.slane %v3170_v45, 1  ;;  %v791_v45 = vrot.slane %v3721_v57, 2 }
  0xc4   : > { %5105 = vst [vmem:[#allocation33_spill] sm:$0xff] %v4204_v8 }
  0xc6   : > { %3092 = vmatmul.msk.f32.gmra.mxu1 %vm380_vm2, %v3856_v63  ;;  %v4214_v56 = vpop.f32.mrf.mxu0 }
  0xc7   : > { %3126 = vmatmul.msk.f32.gmra.mxu2 %vm380_vm2, %v4210_v32 }
  0xc8   : > { %3208 = vmatmul.msk.f32.gmra.mxu3 %vm380_vm2, %v3592_v7 }
  0xc9   : > { %3242 = vmatmul.msk.f32.gmra.mxu0 %vm380_vm2, %v3634_v23  ;;  %v1679_v23 = vrot.slane %v3592_v7, 2 }
  0xca   : > { %v4224_v8 = vpop.f32.mrf.mxu2 }
  0xcb   : > { %v4226_v40 = vpop.f32.mrf.mxu3  ;;  %v4228_v63 = vpop.f32.mrf.mxu1  ;;  %v4252_v14 = vsel %vm742_vm3, %v1679_v23, %v4243_v47 }
  0xcc   : > { %5107 = vst [vmem:[#allocation35_spill] sm:$0xff] %v4226_v40 }
  0xcd   : > { %5109 = vst [vmem:[#allocation37_spill] sm:$0xff] %v4252_v14 }
  0xce   : > { %3093 = vmatmul.msk.f32.gmra.mxu1 %vm380_vm2, %v3859_v24  ;;  %v4234_v32 = vpop.f32.mrf.mxu0 }
  0xcf   : > { %3127 = vmatmul.msk.f32.gmra.mxu2 %vm380_vm2, %v782_v35 }
  0xd0   : > { %3209 = vmatmul.msk.f32.gmra.mxu3 %vm380_vm2, %v3599_v10 }
  0xd1   : > { %3243 = vmatmul.msk.f32.gmra.mxu0 %vm380_vm2, %v1389_v15  ;;  %v786_v15 = vrot.slane %v3624_v20, 2  ;;  %v1394_v20 = vsel %vm297_vm1, %v3694_v48, %v1393_v29 }
  0xd2   : > { %v4246_v49 = vpop.f32.mrf.mxu2 }
  0xd3   : > { %v4248_v24 = vpop.f32.mrf.mxu3  ;;  %v646_v40 = vpop.f32.mrf.mxu1  ;;  %v787_v55 = vsel %vm742_vm3, %v4243_v47, %v786_v15 }
  0xd4   : > { %5108 = vst [vmem:[#allocation36_spill] sm:$0xff] %v4248_v24  ;;  %v647_v24 = vadd.f32 %v646_v40, %v4082_v9  ;;  %v4278_v40 = vrot.slane %v3670_v39, 2 }
  0xd6   : > { %3094 = vmatmul.msk.f32.gmra.mxu1 %vm380_vm2, %v3592_v7  ;;  %v1516_v35 = vpop.f32.mrf.mxu0 }
  0xd7   : > { %3128 = vmatmul.msk.f32.gmra.mxu2 %vm380_vm2, %v4252_v14 }
  0xd8   : > { %3210 = vmatmul.msk.f32.gmra.mxu3 %vm380_vm2, %v3667_v38 }
  0xd9   : > { %3244 = vmatmul.msk.f32.gmra.mxu0 %vm380_vm2, %v3711_v54  ;;  %v1684_v54 = vrot.slane %v3667_v38, 2 }
  0xda   : > { %v909_v23 = vpop.f32.mrf.mxu2 }
  0xdb   : > { %v1206_v31 = vpop.f32.mrf.mxu3  ;;  %v1005_v6 = vadd.f32 %v909_v23, %v647_v24  ;;  %v649_v7 = vpop.f32.mrf.mxu1 }
  0xdd   : > { %v1302_v14 = vadd.f32 %v1206_v31, %v1005_v6  ;;  %v650_v6 = vadd.f32 %v649_v7, %v4102_v43  ;;  %v3173_v43 = vld [vmem:[%s3583_s29 + $0x100] sm:$0x3] }
  0xde   : > { %3095 = vmatmul.msk.f32.gmra.mxu1 %vm380_vm2, %v3599_v10  ;;  %v1519_v0 = vpop.f32.mrf.mxu0 }
  0xdf   : > { %v4271_v9 = vadd.f32 %v1516_v35, %v1302_v14  ;;  %3129 = vmatmul.msk.f32.gmra.mxu2 %vm380_vm2, %v787_v55  ;;  %v4284_v55 = vsel %vm742_vm3, %v1684_v54, %v4278_v40  ;;  %v792_v54 = vsel %vm742_vm3, %v4278_v40, %v791_v45 }
  0xe0   : > { %3211 = vmatmul.msk.f32.gmra.mxu3 %vm380_vm2, %v3670_v39 }
  0xe1   : > { %3245 = vmatmul.msk.f32.gmra.mxu0 %vm380_vm2, %v1394_v20 }
  0xe2   : > { %v912_v10 = vpop.f32.mrf.mxu2 }
  0xe3   : > { %v1209_v31 = vpop.f32.mrf.mxu3  ;;  %v1006_v48 = vadd.f32 %v912_v10, %v650_v6  ;;  %v652_v29 = vpop.f32.mrf.mxu1 }
  0xe4   : > { %v653_v15 = vadd.f32 %v652_v29, %v4126_v2 }
  0xe5   : > { %v1303_v24 = vadd.f32 %v1209_v31, %v1006_v48  ;;  %v4312_v31 = vrot.slane %v3761_v16, 2 }
  0xe6   : > { %3096 = vmatmul.msk.f32.gmra.mxu1 %vm380_vm2, %v3667_v38  ;;  %v1522_v14 = vpop.f32.mrf.mxu0  ;;  %v1398_v38 = vrot.slane %v3173_v43, 1 }
  0xe7   : > { %v4288_v35 = vadd.f32 %v1519_v0, %v1303_v24  ;;  %3130 = vmatmul.msk.f32.gmra.mxu2 %vm380_vm2, %v4284_v55 }
  0xe8   : > { %3212 = vmatmul.msk.f32.gmra.mxu3 %vm380_vm2, %v3758_v11  ;;  %v1399_v57 = vsel %vm297_vm1, %v3786_v33, %v1398_v38 }
  0xe9   : > { %3246 = vmatmul.msk.f32.gmra.mxu0 %vm380_vm2, %v3806_v51  ;;  %v1689_v51 = vrot.slane %v3758_v11, 2 }
  0xea   : > { %v915_v23 = vpop.f32.mrf.mxu2 }
  0xeb   : > { %v1212_v7 = vpop.f32.mrf.mxu3  ;;  %v1007_v20 = vadd.f32 %v915_v23, %v653_v15  ;;  %v655_v0 = vpop.f32.mrf.mxu1  ;;  %v3176_v23 = vld [vmem:[%s3583_s29 + $0x118] sm:$0x3] }
  0xec   : > { %v656_v48 = vadd.f32 %v655_v0, %v4146_v52  ;;  %v5110_v52 = vld [vmem:[#allocation16_spill] sm:$0xff] }
  0xed   : > { %v1304_v6 = vadd.f32 %v1212_v7, %v1007_v20  ;;  %v5111_v7 = vld [vmem:[#allocation14_spill] sm:$0xff]  ;;  %v5112_v0 = vld [vmem:[#allocation20_spill] sm:$0xff] }
  0xee   : > { %3097 = vmatmul.msk.f32.gmra.mxu1 %vm380_vm2, %v3670_v39  ;;  %v1525_v10 = vpop.f32.mrf.mxu0  ;;  %v796_v38 = vrot.slane %v5111_v7, 2 }
  0xef   : > { %v4305_v2 = vadd.f32 %v1522_v14, %v1304_v6  ;;  %3131 = vmatmul.msk.f32.gmra.mxu2 %vm380_vm2, %v792_v54  ;;  %v4318_v14 = vsel %vm742_vm3, %v1689_v51, %v4312_v31  ;;  %v1403_v6 = vrot.slane %v3176_v23, 1 }
  0xf0   : > { %3213 = vmatmul.msk.f32.gmra.mxu3 %vm380_vm2, %v3761_v16  ;;  %v797_v51 = vsel %vm742_vm3, %v4312_v31, %v796_v38 }
  0xf1   : > { %3247 = vmatmul.msk.f32.gmra.mxu0 %vm380_vm2, %v1399_v57 }
  0xf2   : > { %v918_v39 = vpop.f32.mrf.mxu2 }
  0xf3   : > { %v1215_v29 = vpop.f32.mrf.mxu3  ;;  %v1008_v33 = vadd.f32 %v918_v39, %v656_v48  ;;  %v658_v24 = vpop.f32.mrf.mxu1 }
  0xf4   : > { %v659_v20 = vadd.f32 %v658_v24, %v4170_v53  ;;  %v3178_v24 = vld [vmem:[%s3583_s29 + $0x128] sm:$0xff] }
  0xf5   : > { %v1305_v43 = vadd.f32 %v1215_v29, %v1008_v33  ;;  %v1404_v29 = vsel %vm297_vm1, %v3893_v3, %v1403_v6  ;;  %v5113_v33 = vld [vmem:[#allocation17_spill] sm:$0xff]  ;;  %v5114_v6 = vld [vmem:[#allocation2_spill] sm:$0xff] }
  0xf6   : > { %3098 = vmatmul.msk.f32.gmra.mxu1 %vm380_vm2, %v3758_v11  ;;  %v1528_v45 = vpop.f32.mrf.mxu0  ;;  %v4347_v23 = vrot.slane %v5113_v33, 2 }
  0xf7   : > { %v4322_v15 = vadd.f32 %v1525_v10, %v1305_v43  ;;  %3132 = vmatmul.msk.f32.gmra.mxu2 %vm380_vm2, %v4318_v14  ;;  %v1694_v43 = vrot.slane %v5110_v52, 2 }
  0xf8   : > { %3214 = vmatmul.msk.f32.gmra.mxu3 %vm380_vm2, %v5110_v52 }
  0xf9   : > { %3248 = vmatmul.msk.f32.gmra.mxu0 %vm380_vm2, %v5112_v0  ;;  %v4353_v0 = vsel %vm742_vm3, %v1694_v43, %v4347_v23 }
  0xfa   : > { %v921_v54 = vpop.f32.mrf.mxu2 }
  0xfb   : > { %v1218_v11 = vpop.f32.mrf.mxu3  ;;  %v1009_v10 = vadd.f32 %v921_v54, %v659_v20  ;;  %v661_v57 = vpop.f32.mrf.mxu1 }
  0xfd   : > { %v1306_v48 = vadd.f32 %v1218_v11, %v1009_v10  ;;  %v5115_v10 = vrot.slane %v5114_v6, 1 }
  0xfe   : > { %3099 = vmatmul.msk.f32.gmra.mxu1 %vm380_vm2, %v3761_v16  ;;  %v1531_v39 = vpop.f32.mrf.mxu0  ;;  %v662_v16 = vadd.f32 %v661_v57, %v4190_v37 }
  0xff   : > { %v4339_v53 = vadd.f32 %v1528_v45, %v1306_v48  ;;  %3133 = vmatmul.msk.f32.gmra.mxu2 %vm380_vm2, %v797_v51  ;;  %v1406_v45 = vrot.slane %v3178_v24, 1  ;;  %v3179_v51 = vld [vmem:[%s3583_s29 + $0x130] sm:$0x3]  ;;  %v5117_v48 = vld [vmem:[#allocation22_spill] sm:$0xff] }
 0x100   : > { %3215 = vmatmul.msk.f32.gmra.mxu3 %vm380_vm2, %v5113_v33 }
 0x101   : > { %3249 = vmatmul.msk.f32.gmra.mxu0 %vm380_vm2, %v1404_v29  ;;  %v1407_v37 = vsel %vm297_vm1, %v5115_v10, %v1406_v45  ;;  %v801_v29 = vrot.slane %v5117_v48, 2 }
 0x102   : > { %v924_v7 = vpop.f32.mrf.mxu2 }
 0x103   : > { %v1221_v3 = vpop.f32.mrf.mxu3  ;;  %v1010_v38 = vadd.f32 %v924_v7, %v662_v16  ;;  %v664_v20 = vpop.f32.mrf.mxu1  ;;  %v1408_v7 = vrot.slane %v3179_v51, 1 }
 0x104   : > { %v665_v43 = vadd.f32 %v664_v20, %v4214_v56  ;;  %v5071_v56 = vrot.slane %v5114_v6, 2  ;;  %v5118_v20 = vld [vmem:[#allocation3_spill] sm:$0xff] }
 0x105   : > { %v1307_v54 = vadd.f32 %v1221_v3, %v1010_v38 }
 0x106   : > { %3100 = vmatmul.msk.f32.gmra.mxu1 %vm380_vm2, %v5110_v52  ;;  %v1534_v11 = vpop.f32.mrf.mxu0 }
 0x107   : > { %v4360_v57 = vadd.f32 %v1531_v39, %v1307_v54  ;;  %3134 = vmatmul.msk.f32.gmra.mxu2 %vm380_vm2, %v4353_v0  ;;  %v802_v39 = vsel %vm742_vm3, %v4347_v23, %v801_v29 }
 0x108   : > { %3216 = vmatmul.msk.f32.gmra.mxu3 %vm380_vm2, %v5114_v6 }
 0x109   : > { %5116 = vst [vmem:[#allocation16_spill] sm:$0xff] %v4360_v57  ;;  %3250 = vmatmul.msk.f32.gmra.mxu0 %vm380_vm2, %v1407_v37  ;;  %v1409_v57 = vsel %vm297_vm1, %v1406_v45, %v1408_v7  ;;  %v804_v37 = vrot.slane %v5118_v20, 2  ;;  %v5121_v7 = vld [vmem:[#allocation4_spill] sm:$0xff] }
 0x10a   : > { %v927_v52 = vpop.f32.mrf.mxu2 }
 0x10b   : > { %v1224_v16 = vpop.f32.mrf.mxu3  ;;  %v1011_v3 = vadd.f32 %v927_v52, %v665_v43  ;;  %v667_v38 = vpop.f32.mrf.mxu1  ;;  %v805_v45 = vsel %vm742_vm3, %v5071_v56, %v804_v37  ;;  %v5123_v56 = vld [vmem:[#allocation7_spill] sm:$0xff] }
 0x10c   : > { %v668_v51 = vadd.f32 %v667_v38, %v4234_v32  ;;  %v5120_v32 = vld [vmem:[#allocation5_spill] sm:$0xff] }
 0x10d   : > { %v1308_v54 = vadd.f32 %v1224_v16, %v1011_v3  ;;  %v806_v3 = vrot.slane %v5121_v7, 2 }
 0x10e   : > { %3101 = vmatmul.msk.f32.gmra.mxu1 %vm380_vm2, %v5113_v33  ;;  %v1537_v10 = vpop.f32.mrf.mxu0 }
 0x10f   : > { %v4375_v48 = vadd.f32 %v1534_v11, %v1308_v54  ;;  %3135 = vmatmul.msk.f32.gmra.mxu2 %vm380_vm2, %v802_v39  ;;  %v5122_v39 = vld [vmem:[#allocation8_spill] sm:$0xff] }
 0x110   : > { %3217 = vmatmul.msk.f32.gmra.mxu3 %vm380_vm2, %v3178_v24 }
 0x111   : > { %3251 = vmatmul.msk.f32.gmra.mxu0 %vm380_vm2, %v1409_v57  ;;  %v3182_v57 = vld [vmem:[%s3583_s29 + $0x148] sm:$0x3] }
 0x112   : > { %v930_v29 = vpop.f32.mrf.mxu2 }
 0x113   : > { %v1227_v33 = vpop.f32.mrf.mxu3  ;;  %v1012_v43 = vadd.f32 %v930_v29, %v668_v51  ;;  %v670_v52 = vpop.f32.mrf.mxu1  ;;  %v1413_v29 = vrot.slane %v3182_v57, 1 }
 0x114   : > { %v671_v38 = vadd.f32 %v670_v52, %v4074_v18  ;;  %v5124_v18 = vld [vmem:[#allocation6_spill] sm:$0xff]  ;;  %v1704_v52 = vrot.slane %v5120_v32, 2 }
 0x115   : > { %v1309_v11 = vadd.f32 %v1227_v33, %v1012_v43  ;;  %v1414_v7 = vsel %vm297_vm1, %v5123_v56, %v1413_v29  ;;  %v3185_v29 = vld [vmem:[%s3583_s29 + $0x160] sm:$0x3] }
 0x116   : > { %3102 = vmatmul.msk.f32.gmra.mxu1 %vm380_vm2, %v5114_v6  ;;  %v1540_v24 = vpop.f32.mrf.mxu0 }
 0x117   : > { %v4388_v16 = vadd.f32 %v1537_v10, %v1309_v11  ;;  %3136 = vmatmul.msk.f32.gmra.mxu2 %vm380_vm2, %v805_v45  ;;  %v807_v10 = vsel %vm742_vm3, %v804_v37, %v806_v3  ;;  %v4410_v37 = vrot.slane %v5124_v18, 2 }
 0x118   : > { %3218 = vmatmul.msk.f32.gmra.mxu3 %vm380_vm2, %v5120_v32 }
 0x119   : > { %5119 = vst [vmem:[#allocation14_spill] sm:$0xff] %v4388_v16  ;;  %3252 = vmatmul.msk.f32.gmra.mxu0 %vm380_vm2, %v5122_v39 }
 0x11a   : > { %v933_v54 = vpop.f32.mrf.mxu2 }
 0x11b   : > { %v1230_v51 = vpop.f32.mrf.mxu3  ;;  %v1013_v33 = vadd.f32 %v933_v54, %v671_v38  ;;  %v673_v43 = vpop.f32.mrf.mxu1  ;;  %v4416_v38 = vsel %vm742_vm3, %v1704_v52, %v4410_v37 }
 0x11c   : > { %v674_v57 = vadd.f32 %v673_v43, %v4096_v5  ;;  %v5125_v5 = vld [vmem:[#allocation10_spill] sm:$0xff] }
 0x11d   : > { %v1310_v11 = vadd.f32 %v1230_v51, %v1013_v33  ;;  %v5126_v33 = vld [vmem:[#allocation9_spill] sm:$0xff] }
 0x11e   : > { %3103 = vmatmul.msk.f32.gmra.mxu1 %vm380_vm2, %v5118_v20  ;;  %v1543_v45 = vpop.f32.mrf.mxu0  ;;  %v811_v43 = vrot.slane %v5126_v33, 2 }
 0x11f   : > { %v4403_v16 = vadd.f32 %v1540_v24, %v1310_v11  ;;  %3137 = vmatmul.msk.f32.gmra.mxu2 %vm380_vm2, %v807_v10  ;;  %v5127_v11 = vld [vmem:[#allocation13_spill] sm:$0xff] }
 0x120   : > { %3219 = vmatmul.msk.f32.gmra.mxu3 %vm380_vm2, %v5124_v18 }
 0x121   : > { %3253 = vmatmul.msk.f32.gmra.mxu0 %vm380_vm2, %v1414_v7 }
 0x122   : > { %v936_v20 = vpop.f32.mrf.mxu2 }
 0x123   : > { %v1233_v3 = vpop.f32.mrf.mxu3  ;;  %v1014_v56 = vadd.f32 %v936_v20, %v674_v57  ;;  %v676_v24 = vpop.f32.mrf.mxu1  ;;  %v812_v20 = vsel %vm742_vm3, %v4410_v37, %v811_v43 }
 0x124   : > { %v677_v10 = vadd.f32 %v676_v24, %v4118_v30  ;;  %v5129_v24 = vld [vmem:[#allocation11_spill] sm:$0xff] }
 0x125   : > { %v1311_v39 = vadd.f32 %v1233_v3, %v1014_v56  ;;  %v4444_v43 = vrot.slane %v5129_v24, 2 }
 0x126   : > { %3104 = vmatmul.msk.f32.gmra.mxu1 %vm380_vm2, %v5120_v32  ;;  %v1546_v54 = vpop.f32.mrf.mxu0  ;;  %v1418_v32 = vrot.slane %v3185_v29, 1  ;;  %v1709_v29 = vrot.slane %v5125_v5, 2 }
 0x127   : > { %v4420_v51 = vadd.f32 %v1543_v45, %v1311_v39  ;;  %3138 = vmatmul.msk.f32.gmra.mxu2 %vm380_vm2, %v4416_v38  ;;  %v5128_v39 = vld [vmem:[#allocation12_spill] sm:$0xff]  ;;  %5130 = vst [vmem:[#allocation20_spill] sm:$0xff] %v4444_v43 }
 0x128   : > { %3220 = vmatmul.msk.f32.gmra.mxu3 %vm380_vm2, %v5125_v5  ;;  %v1419_v33 = vsel %vm297_vm1, %v5128_v39, %v1418_v32 }
 0x129   : > { %3254 = vmatmul.msk.f32.gmra.mxu0 %vm380_vm2, %v5127_v11 }
 0x12a   : > { %v939_v7 = vpop.f32.mrf.mxu2 }
 0x12b   : > { %v1236_v52 = vpop.f32.mrf.mxu3  ;;  %v1015_v57 = vadd.f32 %v939_v7, %v677_v10  ;;  %v679_v45 = vpop.f32.mrf.mxu1 }
 0x12c   : > { %v680_v10 = vadd.f32 %v679_v45, %v4140_v36  ;;  %v5132_v36 = vld [vmem:[#allocation18_spill] sm:$0xff]  ;;  %v3188_v45 = vld [vmem:[%s3583_s29 + $0x178] sm:$0x3] }
 0x12d   : > { %v1312_v3 = vadd.f32 %v1236_v52, %v1015_v57  ;;  %v4450_v52 = vsel %vm742_vm3, %v1709_v29, %v4444_v43  ;;  %v5134_v29 = vld [vmem:[#allocation21_spill] sm:$0xff] }
 0x12e   : > { %3105 = vmatmul.msk.f32.gmra.mxu1 %vm380_vm2, %v5124_v18  ;;  %v1549_v56 = vpop.f32.mrf.mxu0 }
 0x12f   : > { %v4437_v30 = vadd.f32 %v1546_v54, %v1312_v3  ;;  %3139 = vmatmul.msk.f32.gmra.mxu2 %vm380_vm2, %v812_v20  ;;  %v5133_v3 = vld [vmem:[#allocation15_spill] sm:$0xff] }
 0x130   : > { %3221 = vmatmul.msk.f32.gmra.mxu3 %vm380_vm2, %v5129_v24  ;;  %v816_v39 = vrot.slane %v5133_v3, 2 }
 0x131   : > { %3255 = vmatmul.msk.f32.gmra.mxu0 %vm380_vm2, %v1419_v33 }
 0x132   : > { %v942_v18 = vpop.f32.mrf.mxu2 }
 0x133   : > { %v1239_v11 = vpop.f32.mrf.mxu3  ;;  %v1016_v7 = vadd.f32 %v942_v18, %v680_v10  ;;  %v682_v54 = vpop.f32.mrf.mxu1 }
 0x134   : > { %v683_v33 = vadd.f32 %v682_v54, %v4162_v17 }
 0x135   : > { %v1313_v32 = vadd.f32 %v1239_v11, %v1016_v7  ;;  %v817_v7 = vsel %vm742_vm3, %v4444_v43, %v816_v39 }
 0x136   : > { %3106 = vmatmul.msk.f32.gmra.mxu1 %vm380_vm2, %v5125_v5  ;;  %v1552_v57 = vpop.f32.mrf.mxu0 }
 0x137   : > { %v4454_v20 = vadd.f32 %v1549_v56, %v1313_v32  ;;  %3140 = vmatmul.msk.f32.gmra.mxu2 %vm380_vm2, %v4450_v52  ;;  %v1423_v56 = vrot.slane %v3188_v45, 1  ;;  %v3190_v45 = vld [vmem:[%s3583_s29 + $0x188] sm:$0xff] }
 0x138   : > { %3222 = vmatmul.msk.f32.gmra.mxu3 %vm380_vm2, %v5132_v36 }
 0x139   : > { %5131 = vst [vmem:[#allocation17_spill] sm:$0xff] %v4454_v20  ;;  %3256 = vmatmul.msk.f32.gmra.mxu0 %vm380_vm2, %v5134_v29  ;;  %v1424_v17 = vsel %vm297_vm1, %v3897_v50, %v1423_v56  ;;  %v5136_v29 = vld [vmem:[#allocation19_spill] sm:$0xff]  ;;  %v1426_v56 = vrot.slane %v3190_v45, 1 }
 0x13a   : > { %v945_v10 = vpop.f32.mrf.mxu2  ;;  %v4479_v39 = vrot.slane %v5136_v29, 2 }
 0x13b   : > { %v1242_v5 = vpop.f32.mrf.mxu3  ;;  %v1017_v18 = vadd.f32 %v945_v10, %v683_v33  ;;  %v685_v11 = vpop.f32.mrf.mxu1  ;;  %v1714_v33 = vrot.slane %v5132_v36, 2 }
 0x13c   : > { %v686_v10 = vadd.f32 %v685_v11, %v4184_v4 }
 0x13d   : > { %v1314_v32 = vadd.f32 %v1242_v5, %v1017_v18 }
 0x13e   : > { %3107 = vmatmul.msk.f32.gmra.mxu1 %vm380_vm2, %v5129_v24  ;;  %v1555_v3 = vpop.f32.mrf.mxu0  ;;  %v3189_v24 = vld [vmem:[%s3583_s29 + $0x180] sm:$0xff] }
 0x13f   : > { %v4471_v54 = vadd.f32 %v1552_v57, %v1314_v32  ;;  %3141 = vmatmul.msk.f32.gmra.mxu2 %vm380_vm2, %v817_v7  ;;  %v1425_v5 = vrot.slane %v3189_v24, 1  ;;  %v4486_v32 = vsel %vm742_vm3, %v1714_v33, %v4479_v39 }
 0x140   : > { %3223 = vmatmul.msk.f32.gmra.mxu3 %vm380_vm2, %v5136_v29  ;;  %5137 = vst [vmem:[#allocation22_spill] sm:$0xff] %v4486_v32 }
 0x141   : > { %5135 = vst [vmem:[#allocation2_spill] sm:$0xff] %v4471_v54  ;;  %3257 = vmatmul.msk.f32.gmra.mxu0 %vm380_vm2, %v1424_v17  ;;  %v1427_v4 = vsel %vm297_vm1, %v1425_v5, %v1426_v56  ;;  %v3191_v17 = vld [vmem:[%s3583_s29 + $0x190] sm:$0x3] }
 0x142   : > { %v948_v50 = vpop.f32.mrf.mxu2 }
 0x143   : > { %v1245_v57 = vpop.f32.mrf.mxu3  ;;  %v1018_v18 = vadd.f32 %v948_v50, %v686_v10  ;;  %v688_v7 = vpop.f32.mrf.mxu1  ;;  %v5139_v10 = vld [vmem:[#allocation23_spill] sm:$0xff] }
 0x144   : > { %v821_v33 = vrot.slane %v5139_v10, 2  ;;  %v689_v50 = vadd.f32 %v688_v7, %v4206_v28 }
 0x145   : > { %v1315_v54 = vadd.f32 %v1245_v57, %v1018_v18  ;;  %v1428_v18 = vrot.slane %v3191_v17, 1 }
 0x146   : > { %3108 = vmatmul.msk.f32.gmra.mxu1 %vm380_vm2, %v5132_v36  ;;  %v1558_v20 = vpop.f32.mrf.mxu0 }
 0x147   : > { %v4491_v11 = vadd.f32 %v1555_v3, %v1315_v54  ;;  %3142 = vmatmul.msk.f32.gmra.mxu2 %vm380_vm2, %v4486_v32  ;;  %v822_v3 = vsel %vm742_vm3, %v4479_v39, %v821_v33  ;;  %v3295_v32 = vld [vmem:[%s3583_s29 + $0x38] sm:$0xff]  ;;  %v1429_v10 = vsel %vm297_vm1, %v1426_v56, %v1428_v18  ;;  %v3296_v18 = vld [vmem:[%s3583_s29 + $0x40] sm:$0x3] }
 0x148   : > { %3224 = vmatmul.msk.f32.gmra.mxu3 %vm380_vm2, %v3189_v24 }
 0x149   : > { %5138 = vst [vmem:[#allocation3_spill] sm:$0xff] %v4491_v11  ;;  %3258 = vmatmul.msk.f32.gmra.mxu0 %vm380_vm2, %v1427_v4  ;;  %v3294_v11 = vld [vmem:[%s3583_s29 + $0x30] sm:$0xff]  ;;  %v2252_v4 = vrot.slane %v3295_v32, 1 }
 0x14a   : > { %v951_v36 = vpop.f32.mrf.mxu2  ;;  %v2251_v7 = vrot.slane %v3294_v11, 1 }
 0x14b   : > { %v1248_v57 = vpop.f32.mrf.mxu3  ;;  %v1019_v43 = vadd.f32 %v951_v36, %v689_v50  ;;  %v691_v5 = vpop.f32.mrf.mxu1  ;;  %v2545_v50 = vrot.slane %v3294_v11, 2 }
 0x14c   : > { %v692_v17 = vadd.f32 %v691_v5, %v4228_v63  ;;  %v2253_v56 = vsel %vm297_vm1, %v2251_v7, %v2252_v4  ;;  %v1647_v5 = vrot.slane %v3963_v58, 2 }
 0x14d   : > { %v1316_v54 = vadd.f32 %v1248_v57, %v1019_v43 }
 0x14e   : > { %3109 = vmatmul.msk.f32.gmra.mxu1 %vm380_vm2, %v5136_v29  ;;  %v1561_v24 = vpop.f32.mrf.mxu0  ;;  %v2546_v29 = vrot.slane %v3295_v32, 2 }
 0x14f   : > { %v4507_v28 = vadd.f32 %v1558_v20, %v1316_v54  ;;  %3143 = vmatmul.msk.f32.gmra.mxu2 %vm380_vm2, %v822_v3  ;;  %v2254_v54 = vrot.slane %v3296_v18, 1 }
 0x150   : > { %3225 = vmatmul.msk.f32.gmra.mxu3 %vm380_vm2, %v3190_v45  ;;  %v2547_v3 = vsel %vm742_vm3, %v2545_v50, %v2546_v29 }
 0x151   : > { %3259 = vmatmul.msk.f32.gmra.mxu0 %vm380_vm2, %v1429_v10  ;;  %v2255_v50 = vsel %vm297_vm1, %v2252_v4, %v2254_v54 }
 0x152   : > { %v954_v43 = vpop.f32.mrf.mxu2 }
 0x153   : > { %v1251_v33 = vpop.f32.mrf.mxu3  ;;  %v1020_v36 = vadd.f32 %v954_v43, %v692_v17  ;;  %v694_v57 = vpop.f32.mrf.mxu1  ;;  %v2548_v17 = vrot.slane %v3296_v18, 2 }
 0x154   : > { %v695_v10 = vadd.f32 %v694_v57, %v4092_v60 }
 0x155   : > { %v1317_v20 = vadd.f32 %v1251_v33, %v1020_v36  ;;  %v3297_v36 = vld [vmem:[%s3583_s29 + $0x48] sm:$0xff]  ;;  %v2549_v60 = vsel %vm742_vm3, %v2546_v29, %v2548_v17 }
 0x156   : > { %3262 = vmatmul.msk.f32.vlgmr.msra.gmra.mxu1 %vm380_vm2, %v3984_v59  ;;  %v1564_v45 = vpop.f32.mrf.mxu0 }
 0x157   : > { %v4518_v63 = vadd.f32 %v1561_v24, %v1317_v20  ;;  %3344 = vmatmul.msk.f32.vlgmr.msra.gmra.mxu2 %vm380_vm2, %v3294_v11  ;;  %v1648_v24 = vsel %vm742_vm3, %v3979_v34, %v1647_v5  ;;  %v2256_v20 = vrot.slane %v3297_v36, 1  ;;  %v2550_v5 = vrot.slane %v3297_v36, 2 }
 0x158   : > { %3378 = vmatmul.msk.f32.vlgmr.msra.gmra.mxu3 %vm380_vm2, %v2253_v56  ;;  %v3298_v56 = vld [vmem:[%s3583_s29 + $0x50] sm:$0xff] }
 0x159   : > { %3412 = vmatmul.msk.f32.vlgmr.msra.gmra.mxu0 %vm380_vm2, %v2547_v3  ;;  %v2257_v18 = vrot.slane %v3298_v56, 1  ;;  %v2551_v54 = vrot.slane %v3298_v56, 2 }
 0x15a   : > { %v957_v7 = vpop.f32.mrf.mxu2 }
 0x15b   : > { %v1254_v59 = vpop.f32.mrf.mxu3  ;;  %v1021_v43 = vadd.f32 %v957_v7, %v695_v10  ;;  %v697_v33 = vpop.f32.mrf.mxu1  ;;  %v2258_v29 = vsel %vm297_vm1, %v2256_v20, %v2257_v18  ;;  %v2552_v17 = vsel %vm742_vm3, %v2550_v5, %v2551_v54 }
 0x15c   : > { %v698_v34 = vadd.f32 %v697_v33, %v4114_v12 }
 0x15d   : > { %v1318_v11 = vadd.f32 %v1254_v59, %v1021_v43  ;;  %v3299_v59 = vld [vmem:[%s3583_s29 + $0x58] sm:$0x3]  ;;  %v1652_v43 = vrot.slane %v3993_v21, 2 }
 0x15e   : > { %3263 = vmatmul.msk.f32.gmra.mxu1 %vm380_vm2, %v1648_v24  ;;  %v1567_v58 = vpop.f32.mrf.mxu0  ;;  %v2259_v33 = vrot.slane %v3299_v59, 1 }
 0x15f   : > { %v4532_v57 = vadd.f32 %v1564_v45, %v1318_v11  ;;  %3345 = vmatmul.msk.f32.gmra.mxu2 %vm380_vm2, %v3295_v32  ;;  %v2553_v11 = vrot.slane %v3299_v59, 2 }
 0x160   : > { %3379 = vmatmul.msk.f32.gmra.mxu3 %vm380_vm2, %v2255_v50 }
 0x161   : > { %3413 = vmatmul.msk.f32.gmra.mxu0 %vm380_vm2, %v2549_v60 }
 0x162   : > { %v960_v4 = vpop.f32.mrf.mxu2 }
 0x163   : > { %v1257_v3 = vpop.f32.mrf.mxu3  ;;  %v1022_v10 = vadd.f32 %v960_v4, %v698_v34  ;;  %v700_v7 = vpop.f32.mrf.mxu1  ;;  %v2260_v34 = vsel %vm297_vm1, %v2257_v18, %v2259_v33  ;;  %v3300_v4 = vld [vmem:[%s3583_s29 + $0x60] sm:$0xff]  ;;  %v3302_v33 = vld [vmem:[%s3583_s29 + $0x70] sm:$0x3] }
 0x164   : > { %v701_v24 = vadd.f32 %v700_v7, %v4136_v13  ;;  %v2554_v13 = vsel %vm742_vm3, %v2551_v54, %v2553_v11 }
 0x165   : > { %v1319_v45 = vadd.f32 %v1257_v3, %v1022_v10  ;;  %v3301_v3 = vld [vmem:[%s3583_s29 + $0x68] sm:$0xff]  ;;  %v2261_v10 = vrot.slane %v3300_v4, 1 }
 0x166   : > { %3264 = vmatmul.msk.f32.gmra.mxu1 %vm380_vm2, %v4015_v42  ;;  %v1570_v32 = vpop.f32.mrf.mxu0  ;;  %v2262_v7 = vrot.slane %v3301_v3, 1  ;;  %v2556_v59 = vrot.slane %v3301_v3, 2 }
 0x167   : > { %v4543_v12 = vadd.f32 %v1567_v58, %v1319_v45  ;;  %3346 = vmatmul.msk.f32.gmra.mxu2 %vm380_vm2, %v3297_v36  ;;  %v1653_v58 = vsel %vm742_vm3, %v4010_v1, %v1652_v43  ;;  %v2555_v45 = vrot.slane %v3300_v4, 2 }
 0x168   : > { %3380 = vmatmul.msk.f32.gmra.mxu3 %vm380_vm2, %v2258_v29  ;;  %v2263_v54 = vsel %vm297_vm1, %v2261_v10, %v2262_v7  ;;  %v3304_v10 = vld [vmem:[%s3583_s29 + $0x80] sm:$0xff] }
 0x169   : > { %3414 = vmatmul.msk.f32.gmra.mxu0 %vm380_vm2, %v2552_v17 }
 0x16a   : > { %v963_v50 = vpop.f32.mrf.mxu2 }
 0x16b   : > { %v1260_v42 = vpop.f32.mrf.mxu3  ;;  %v1023_v60 = vadd.f32 %v963_v50, %v701_v24  ;;  %v703_v20 = vpop.f32.mrf.mxu1  ;;  %v2557_v24 = vsel %vm742_vm3, %v2555_v45, %v2556_v59  ;;  %v1657_v50 = vrot.slane %v4024_v46, 2 }
 0x16c   : > { %v704_v1 = vadd.f32 %v703_v20, %v4158_v61  ;;  %v2558_v20 = vrot.slane %v3302_v33, 2 }
 0x16d   : > { %v1320_v36 = vadd.f32 %v1260_v42, %v1023_v60  ;;  %v2264_v42 = vrot.slane %v3302_v33, 1 }
 0x16e   : > { %3265 = vmatmul.msk.f32.gmra.mxu1 %vm380_vm2, %v1653_v58  ;;  %v1573_v21 = vpop.f32.mrf.mxu0 }
 0x16f   : > { %v4557_v5 = vadd.f32 %v1570_v32, %v1320_v36  ;;  %3347 = vmatmul.msk.f32.gmra.mxu2 %vm380_vm2, %v3298_v56  ;;  %v1658_v36 = vsel %vm742_vm3, %v4040_v27, %v1657_v50  ;;  %v1662_v50 = vrot.slane %v4054_v26, 2 }
 0x170   : > { %3381 = vmatmul.msk.f32.gmra.mxu3 %vm380_vm2, %v2260_v34 }
 0x171   : > { %3415 = vmatmul.msk.f32.gmra.mxu0 %vm380_vm2, %v2554_v13  ;;  %v3303_v13 = vld [vmem:[%s3583_s29 + $0x78] sm:$0xff] }
 0x172   : > { %v966_v18 = vpop.f32.mrf.mxu2 }
 0x173   : > { %v1263_v29 = vpop.f32.mrf.mxu3  ;;  %v1024_v17 = vadd.f32 %v966_v18, %v704_v1  ;;  %v706_v43 = vpop.f32.mrf.mxu1  ;;  %v2266_v18 = vrot.slane %v3303_v13, 1 }
 0x174   : > { %v707_v11 = vadd.f32 %v706_v43, %v4180_v25  ;;  %v2559_v25 = vsel %vm742_vm3, %v2556_v59, %v2558_v20  ;;  %v2561_v43 = vrot.slane %v3304_v10, 2 }
 0x175   : > { %v1321_v32 = vadd.f32 %v1263_v29, %v1024_v17  ;;  %v2267_v29 = vrot.slane %v3304_v10, 1  ;;  %v2560_v17 = vrot.slane %v3303_v13, 2 }
 0x176   : > { %3266 = vmatmul.msk.f32.gmra.mxu1 %vm380_vm2, %v4045_v22  ;;  %v1576_v56 = vpop.f32.mrf.mxu0 }
 0x177   : > { %v4568_v61 = vadd.f32 %v1573_v21, %v1321_v32  ;;  %3348 = vmatmul.msk.f32.gmra.mxu2 %vm380_vm2, %v3300_v4  ;;  %v2265_v21 = vsel %vm297_vm1, %v2262_v7, %v2264_v42  ;;  %v2268_v59 = vsel %vm297_vm1, %v2266_v18, %v2267_v29 }
 0x178   : > { %3382 = vmatmul.msk.f32.gmra.mxu3 %vm380_vm2, %v2263_v54 }
 0x179   : > { %3416 = vmatmul.msk.f32.gmra.mxu0 %vm380_vm2, %v2557_v24  ;;  %v2562_v24 = vsel %vm742_vm3, %v2560_v17, %v2561_v43 }
 0x17a   : > { %v969_v60 = vpop.f32.mrf.mxu2 }
 0x17b   : > { %v1266_v22 = vpop.f32.mrf.mxu3  ;;  %v1025_v58 = vadd.f32 %v969_v60, %v707_v11  ;;  %v709_v34 = vpop.f32.mrf.mxu1 }
 0x17c   : > { %v710_v27 = vadd.f32 %v709_v34, %v4202_v62  ;;  %v1663_v34 = vsel %vm742_vm3, %v4071_v19, %v1662_v50  ;;  %v5140_v50 = vld [vmem:[#allocation24_spill] sm:$0xff] }
 0x17d   : > { %v1322_v4 = vadd.f32 %v1266_v22, %v1025_v58 }
 0x17e   : > { %3267 = vmatmul.msk.f32.gmra.mxu1 %vm380_vm2, %v1658_v36  ;;  %v1579_v46 = vpop.f32.mrf.mxu0 }
 0x17f   : > { %v4582_v1 = vadd.f32 %v1576_v56, %v1322_v4  ;;  %3349 = vmatmul.msk.f32.gmra.mxu2 %vm380_vm2, %v3301_v3  ;;  %v3305_v56 = vld [vmem:[%s3583_s29 + $0x88] sm:$0x3]  ;;  %v3306_v4 = vld [vmem:[%s3583_s29 + $0x90] sm:$0xff] }
 0x180   : > { %3383 = vmatmul.msk.f32.gmra.mxu3 %vm380_vm2, %v2265_v21  ;;  %v2269_v42 = vrot.slane %v3305_v56, 1  ;;  %v2563_v22 = vrot.slane %v3305_v56, 2  ;;  %v3476_v56 = vld [vmem:[%s3583_s29 + $0x88] sm:$0x3] }
 0x181   : > { %3417 = vmatmul.msk.f32.gmra.mxu0 %vm380_vm2, %v2559_v25  ;;  %v2271_v25 = vrot.slane %v3306_v4, 1 }
 0x182   : > { %v972_v7 = vpop.f32.mrf.mxu2  ;;  %v2270_v36 = vsel %vm297_vm1, %v2267_v29, %v2269_v42 }
 0x183   : > { %v1269_v45 = vpop.f32.mrf.mxu3  ;;  %v1026_v54 = vadd.f32 %v972_v7, %v710_v27  ;;  %v712_v32 = vpop.f32.mrf.mxu1  ;;  %v2565_v7 = vrot.slane %v3306_v4, 2 }
 0x184   : > { %v713_v11 = vadd.f32 %v712_v32, %v4224_v8  ;;  %v2564_v8 = vsel %vm742_vm3, %v2561_v43, %v2563_v22 }
 0x185   : > { %v1323_v33 = vadd.f32 %v1269_v45, %v1026_v54 }
 0x186   : > { %3268 = vmatmul.msk.f32.gmra.mxu1 %vm380_vm2, %v4078_v41  ;;  %v1582_v3 = vpop.f32.mrf.mxu0 }
 0x187   : > { %v4593_v62 = vadd.f32 %v1579_v46, %v1323_v33  ;;  %3350 = vmatmul.msk.f32.gmra.mxu2 %vm380_vm2, %v3303_v13  ;;  %v3307_v13 = vld [vmem:[%s3583_s29 + $0x98] sm:$0xff] }
 0x188   : > { %3384 = vmatmul.msk.f32.gmra.mxu3 %vm380_vm2, %v2268_v59  ;;  %v2272_v18 = vrot.slane %v3307_v13, 1  ;;  %v2566_v45 = vrot.slane %v3307_v13, 2  ;;  %v3308_v59 = vld [vmem:[%s3583_s29 + $0xa0] sm:$0x3] }
 0x189   : > { %3418 = vmatmul.msk.f32.gmra.mxu0 %vm380_vm2, %v2562_v24  ;;  %v2274_v24 = vrot.slane %v3308_v59, 1 }
 0x18a   : > { %v975_v60 = vpop.f32.mrf.mxu2  ;;  %v2273_v54 = vsel %vm297_vm1, %v2271_v25, %v2272_v18  ;;  %v2567_v33 = vsel %vm742_vm3, %v2565_v7, %v2566_v45 }
 0x18b   : > { %v1272_v41 = vpop.f32.mrf.mxu3  ;;  %v1027_v20 = vadd.f32 %v975_v60, %v713_v11  ;;  %v715_v58 = vpop.f32.mrf.mxu1  ;;  %v2568_v60 = vrot.slane %v3308_v59, 2 }
 0x18c   : > { %v716_v19 = vadd.f32 %v715_v58, %v4246_v49 }
 0x18d   : > { %v1324_v21 = vadd.f32 %v1272_v41, %v1027_v20  ;;  %v5141_v20 = vld [vmem:[#allocation25_spill] sm:$0xff] }
 0x18e   : > { %3269 = vmatmul.msk.f32.gmra.mxu1 %vm380_vm2, %v1663_v34  ;;  %v1585_v26 = vpop.f32.mrf.mxu0  ;;  %v2275_v34 = vsel %vm297_vm1, %v2272_v18, %v2274_v24 }
 0x18f   : > { %v4607_v46 = vadd.f32 %v1582_v3, %v1324_v21  ;;  %3351 = vmatmul.msk.f32.gmra.mxu2 %vm380_vm2, %v3304_v10  ;;  %v1667_v3 = vrot.slane %v3476_v56, 2  ;;  %v3309_v21 = vld [vmem:[%s3583_s29 + $0xa8] sm:$0xff] }
 0x190   : > { %3385 = vmatmul.msk.f32.gmra.mxu3 %vm380_vm2, %v2270_v36 }
 0x191   : > { %3419 = vmatmul.msk.f32.gmra.mxu0 %vm380_vm2, %v2564_v8  ;;  %v1668_v58 = vsel %vm742_vm3, %v5141_v20, %v1667_v3  ;;  %v2569_v8 = vsel %vm742_vm3, %v2566_v45, %v2568_v60 }
 0x192   : > { %v978_v29 = vpop.f32.mrf.mxu2 }
 0x193   : > { %v1275_v27 = vpop.f32.mrf.mxu3  ;;  %v1028_v17 = vadd.f32 %v978_v29, %v716_v19  ;;  %v718_v43 = vpop.f32.mrf.mxu1  ;;  %v2276_v19 = vrot.slane %v3309_v21, 1 }
 0x194   : > { %v719_v42 = vadd.f32 %v718_v43, %v5140_v50  ;;  %v2570_v43 = vrot.slane %v3309_v21, 2  ;;  %v3477_v50 = vld [vmem:[%s3583_s29 + $0xa0] sm:$0x3] }
 0x195   : > { %v1325_v32 = vadd.f32 %v1275_v27, %v1028_v17  ;;  %v5142_v27 = vld [vmem:[#allocation26_spill] sm:$0xff] }
 0x196   : > { %3270 = vmatmul.msk.f32.gmra.mxu1 %vm380_vm2, %v4122_v44  ;;  %v1588_v10 = vpop.f32.mrf.mxu0 }
 0x197   : > { %v4618_v49 = vadd.f32 %v1585_v26, %v1325_v32  ;;  %3352 = vmatmul.msk.f32.gmra.mxu2 %vm380_vm2, %v3306_v4  ;;  %v3310_v4 = vld [vmem:[%s3583_s29 + $0xb0] sm:$0xff] }
 0x198   : > { %3386 = vmatmul.msk.f32.gmra.mxu3 %vm380_vm2, %v2273_v54  ;;  %v2277_v29 = vrot.slane %v3310_v4, 1  ;;  %v2571_v54 = vrot.slane %v3310_v4, 2 }
 0x199   : > { %3420 = vmatmul.msk.f32.gmra.mxu0 %vm380_vm2, %v2567_v33  ;;  %v3311_v33 = vld [vmem:[%s3583_s29 + $0xb8] sm:$0x3] }
 0x19a   : > { %v981_v11 = vpop.f32.mrf.mxu2  ;;  %v2278_v59 = vsel %vm297_vm1, %v2276_v19, %v2277_v29  ;;  %v2572_v3 = vsel %vm742_vm3, %v2570_v43, %v2571_v54  ;;  %v2573_v20 = vrot.slane %v3311_v33, 2  ;;  %v3312_v19 = vld [vmem:[%s3583_s29 + $0xc0] sm:$0xff] }
 0x19b   : > { %v1278_v44 = vpop.f32.mrf.mxu3  ;;  %v1029_v41 = vadd.f32 %v981_v11, %v719_v42  ;;  %v721_v22 = vpop.f32.mrf.mxu1  ;;  %v1672_v42 = vrot.slane %v3477_v50, 2  ;;  %v2279_v11 = vrot.slane %v3311_v33, 1  ;;  %v2281_v43 = vrot.slane %v3312_v19, 1 }
 0x19c   : > { %v722_v7 = vadd.f32 %v721_v22, %v5142_v27  ;;  %v3313_v27 = vld [vmem:[%s3583_s29 + $0xc8] sm:$0xff]  ;;  %v2575_v33 = vrot.slane %v3312_v19, 2 }
 0x19d   : > { %v1326_v36 = vadd.f32 %v1278_v44, %v1029_v41  ;;  %v5144_v44 = vld [vmem:[#allocation27_spill] sm:$0xff] }
 0x19e   : > { %3271 = vmatmul.msk.f32.gmra.mxu1 %vm380_vm2, %v1668_v58  ;;  %v1591_v26 = vpop.f32.mrf.mxu0 }
 0x19f   : > { %v4632_v25 = vadd.f32 %v1588_v10, %v1326_v36  ;;  %3353 = vmatmul.msk.f32.gmra.mxu2 %vm380_vm2, %v3307_v13  ;;  %v5143_v13 = vld [vmem:[#allocation30_spill] sm:$0xff]  ;;  %v5145_v36 = vld [vmem:[#allocation28_spill] sm:$0xff] }
 0x1a0   : > { %3387 = vmatmul.msk.f32.gmra.mxu3 %vm380_vm2, %v2275_v34 }
 0x1a1   : > { %3421 = vmatmul.msk.f32.gmra.mxu0 %vm380_vm2, %v2569_v8 }
 0x1a2   : > { %v984_v18 = vpop.f32.mrf.mxu2 }
 0x1a3   : > { %v1281_v17 = vpop.f32.mrf.mxu3  ;;  %v1030_v32 = vadd.f32 %v984_v18, %v722_v7  ;;  %v724_v45 = vpop.f32.mrf.mxu1  ;;  %v2574_v18 = vsel %vm742_vm3, %v2571_v54, %v2573_v20 }
 0x1a4   : > { %v725_v60 = vadd.f32 %v724_v45, %v5144_v44  ;;  %v5146_v45 = vld [vmem:[#allocation29_spill] sm:$0xff] }
 0x1a5   : > { %v1327_v10 = vadd.f32 %v1281_v17, %v1030_v32  ;;  %v2282_v32 = vrot.slane %v3313_v27, 1 }
 0x1a6   : > { %3272 = vmatmul.msk.f32.gmra.mxu1 %vm380_vm2, %v5143_v13  ;;  %v1594_v56 = vpop.f32.mrf.mxu0  ;;  %v2576_v13 = vrot.slane %v3313_v27, 2 }
 0x1a7   : > { %v4643_v24 = vadd.f32 %v1591_v26, %v1327_v10  ;;  %3354 = vmatmul.msk.f32.gmra.mxu2 %vm380_vm2, %v3309_v21  ;;  %v1673_v26 = vsel %vm742_vm3, %v5145_v36, %v1672_v42  ;;  %v2280_v21 = vsel %vm297_vm1, %v2277_v29, %v2279_v11  ;;  %v3314_v42 = vld [vmem:[%s3583_s29 + $0xd0] sm:$0x3] }
 0x1a8   : > { %3388 = vmatmul.msk.f32.gmra.mxu3 %vm380_vm2, %v2278_v59  ;;  %v2577_v44 = vsel %vm742_vm3, %v2575_v33, %v2576_v13  ;;  %v2284_v20 = vrot.slane %v3314_v42, 1 }
 0x1a9   : > { %3422 = vmatmul.msk.f32.gmra.mxu0 %vm380_vm2, %v2572_v3 }
 0x1aa   : > { %v987_v41 = vpop.f32.mrf.mxu2 }
 0x1ab   : > { %v1284_v22 = vpop.f32.mrf.mxu3  ;;  %v1031_v58 = vadd.f32 %v987_v41, %v725_v60  ;;  %v727_v34 = vpop.f32.mrf.mxu1  ;;  %v3478_v41 = vld [vmem:[%s3583_s29 + $0xb8] sm:$0x3] }
 0x1ac   : > { %v728_v59 = vadd.f32 %v727_v34, %v5146_v45 }
 0x1ad   : > { %v1328_v8 = vadd.f32 %v1284_v22, %v1031_v58  ;;  %v1677_v22 = vrot.slane %v3478_v41, 2  ;;  %v5148_v58 = vld [vmem:[#allocation31_spill] sm:$0xff] }
 0x1ae   : > { %3273 = vmatmul.msk.f32.gmra.mxu1 %vm380_vm2, %v1673_v26  ;;  %v1597_v7 = vpop.f32.mrf.mxu0 }
 0x1af   : > { %v4657_v17 = vadd.f32 %v1594_v56, %v1328_v8  ;;  %3355 = vmatmul.msk.f32.gmra.mxu2 %vm380_vm2, %v3310_v4  ;;  %v2283_v56 = vsel %vm297_vm1, %v2281_v43, %v2282_v32  ;;  %v5147_v4 = vld [vmem:[#allocation34_spill] sm:$0xff] }
 0x1b0   : > { %3389 = vmatmul.msk.f32.gmra.mxu3 %vm380_vm2, %v2280_v21  ;;  %v2578_v21 = vrot.slane %v3314_v42, 2 }
 0x1b1   : > { %3423 = vmatmul.msk.f32.gmra.mxu0 %vm380_vm2, %v2574_v18 }
 0x1b2   : > { %v990_v29 = vpop.f32.mrf.mxu2  ;;  %v2579_v33 = vsel %vm742_vm3, %v2576_v13, %v2578_v21  ;;  %v3479_v21 = vld [vmem:[%s3583_s29 + $0xd0] sm:$0x3] }
 0x1b3   : > { %v1287_v10 = vpop.f32.mrf.mxu3  ;;  %v1032_v3 = vadd.f32 %v990_v29, %v728_v59  ;;  %v730_v54 = vpop.f32.mrf.mxu1  ;;  %v3315_v59 = vld [vmem:[%s3583_s29 + $0xd8] sm:$0xff]  ;;  %v3316_v29 = vld [vmem:[%s3583_s29 + $0xe0] sm:$0xff] }
 0x1b4   : > { %v731_v34 = vadd.f32 %v730_v54, %v5148_v58  ;;  %v2286_v54 = vrot.slane %v3315_v59, 1  ;;  %v2581_v41 = vrot.slane %v3316_v29, 2  ;;  %v3317_v58 = vld [vmem:[%s3583_s29 + $0xe8] sm:$0x3] }
 0x1b5   : > { %v1329_v50 = vadd.f32 %v1287_v10, %v1032_v3 }
 0x1b6   : > { %3274 = vmatmul.msk.f32.gmra.mxu1 %vm380_vm2, %v5147_v4  ;;  %v1600_v11 = vpop.f32.mrf.mxu0 }
 0x1b7   : > { %v4668_v60 = vadd.f32 %v1597_v7, %v1329_v50  ;;  %3356 = vmatmul.msk.f32.gmra.mxu2 %vm380_vm2, %v3312_v19  ;;  %v5149_v7 = vld [vmem:[#allocation32_spill] sm:$0xff]  ;;  %v2285_v19 = vsel %vm297_vm1, %v2282_v32, %v2284_v20  ;;  %v5150_v50 = vld [vmem:[#allocation33_spill] sm:$0xff] }
 0x1b8   : > { %3390 = vmatmul.msk.f32.gmra.mxu3 %vm380_vm2, %v2283_v56  ;;  %v1678_v43 = vsel %vm742_vm3, %v5149_v7, %v1677_v22  ;;  %v2287_v56 = vrot.slane %v3316_v29, 1  ;;  %v5152_v7 = vld [vmem:[#allocation35_spill] sm:$0xff] }
 0x1b9   : > { %3424 = vmatmul.msk.f32.gmra.mxu0 %vm380_vm2, %v2577_v44  ;;  %v2580_v44 = vrot.slane %v3315_v59, 2 }
 0x1ba   : > { %v993_v36 = vpop.f32.mrf.mxu2 }
 0x1bb   : > { %v1290_v26 = vpop.f32.mrf.mxu3  ;;  %v1033_v8 = vadd.f32 %v993_v36, %v731_v34  ;;  %v733_v18 = vpop.f32.mrf.mxu1  ;;  %v2582_v36 = vsel %vm742_vm3, %v2580_v44, %v2581_v41 }
 0x1bc   : > { %v734_v42 = vadd.f32 %v733_v18, %v5150_v50  ;;  %v2289_v18 = vrot.slane %v3317_v58, 1 }
 0x1bd   : > { %v1330_v45 = vadd.f32 %v1290_v26, %v1033_v8  ;;  %v1682_v8 = vrot.slane %v3479_v21, 2 }
 0x1be   : > { %3275 = vmatmul.msk.f32.gmra.mxu1 %vm380_vm2, %v1678_v43  ;;  %v1603_v10 = vpop.f32.mrf.mxu0 }
 0x1bf   : > { %v4682_v3 = vadd.f32 %v1600_v11, %v1330_v45  ;;  %3357 = vmatmul.msk.f32.gmra.mxu2 %vm380_vm2, %v3313_v27  ;;  %v2288_v11 = vsel %vm297_vm1, %v2286_v54, %v2287_v56  ;;  %v5151_v27 = vld [vmem:[#allocation37_spill] sm:$0xff] }
 0x1c0   : > { %3391 = vmatmul.msk.f32.gmra.mxu3 %vm380_vm2, %v2285_v19 }
 0x1c1   : > { %3425 = vmatmul.msk.f32.gmra.mxu0 %vm380_vm2, %v2579_v33  ;;  %v2583_v33 = vrot.slane %v3317_v58, 2 }
 0x1c2   : > { %v996_v32 = vpop.f32.mrf.mxu2 }
 0x1c3   : > { %v1293_v4 = vpop.f32.mrf.mxu3  ;;  %v1034_v22 = vadd.f32 %v996_v32, %v734_v42  ;;  %v736_v13 = vpop.f32.mrf.mxu1  ;;  %v3318_v32 = vld [vmem:[%s3583_s29 + $0xf0] sm:$0xff] }
 0x1c4   : > { %v737_v43 = vadd.f32 %v736_v13, %v5152_v7  ;;  %v3320_v7 = vld [vmem:[%s3583_s29 + $0x100] sm:$0x3] }
 0x1c5   : > { %v1331_v20 = vadd.f32 %v1293_v4, %v1034_v22  ;;  %v3319_v4 = vld [vmem:[%s3583_s29 + $0xf8] sm:$0xff]  ;;  %v2584_v22 = vsel %vm742_vm3, %v2581_v41, %v2583_v33 }
 0x1c6   : > { %3276 = vmatmul.msk.f32.gmra.mxu1 %vm380_vm2, %v5151_v27  ;;  %v1606_v34 = vpop.f32.mrf.mxu0  ;;  %v2586_v21 = vrot.slane %v3319_v4, 2 }
 0x1c7   : > { %v4693_v26 = vadd.f32 %v1603_v10, %v1331_v20  ;;  %3358 = vmatmul.msk.f32.gmra.mxu2 %vm380_vm2, %v3315_v59  ;;  %v1683_v10 = vsel %vm742_vm3, %v4243_v47, %v1682_v8  ;;  %v2290_v59 = vsel %vm297_vm1, %v2287_v56, %v2289_v18  ;;  %v2292_v20 = vrot.slane %v3319_v4, 1  ;;  %v5153_v47 = vld [vmem:[#allocation36_spill] sm:$0xff] }
 0x1c8   : > { %3392 = vmatmul.msk.f32.gmra.mxu3 %vm380_vm2, %v2288_v11  ;;  %v2291_v11 = vrot.slane %v3318_v32, 1 }
 0x1c9   : > { %3426 = vmatmul.msk.f32.gmra.mxu0 %vm380_vm2, %v2582_v36  ;;  %v2585_v36 = vrot.slane %v3318_v32, 2 }
 0x1ca   : > { %v999_v19 = vpop.f32.mrf.mxu2 }
 0x1cb   : > { %v1296_v45 = vpop.f32.mrf.mxu3  ;;  %v1035_v54 = vadd.f32 %v999_v19, %v737_v43  ;;  %v739_v50 = vpop.f32.mrf.mxu1  ;;  %v2587_v43 = vsel %vm742_vm3, %v2585_v36, %v2586_v21 }
 0x1cc   : > { %v740_v58 = vadd.f32 %v739_v50, %v5153_v47  ;;  %v4731_v47 = vld [vmem:[%s5030_s2] ss:$0 sm:$0xff] }
 0x1cd   : > { %v1332_v42 = vadd.f32 %v1296_v45, %v1035_v54  ;;  %v3480_v45 = vld [vmem:[%s3583_s29 + $0xe8] sm:$0x3]  ;;  %v2294_v54 = vrot.slane %v3320_v7, 1 }
 0x1ce   : > { %3277 = vmatmul.msk.f32.gmra.mxu1 %vm380_vm2, %v1683_v10  ;;  %v1609_v44 = vpop.f32.mrf.mxu0  ;;  %v1687_v33 = vrot.slane %v3480_v45, 2 }
 0x1cf   : > { %v4707_v13 = vadd.f32 %v1606_v34, %v1332_v42  ;;  %3359 = vmatmul.msk.f32.gmra.mxu2 %vm380_vm2, %v3316_v29  ;;  %v2293_v34 = vsel %vm297_vm1, %v2291_v11, %v2292_v20 }
 0x1d0   : > { %3393 = vmatmul.msk.f32.gmra.mxu3 %vm380_vm2, %v2290_v59  ;;  %v2588_v59 = vrot.slane %v3320_v7, 2 }
 0x1d1   : > { %3427 = vmatmul.msk.f32.gmra.mxu0 %vm380_vm2, %v2584_v22  ;;  %v2295_v22 = vsel %vm297_vm1, %v2292_v20, %v2294_v54 }
 0x1d2   : > { %v1002_v56 = vpop.f32.mrf.mxu2 }
 0x1d3   : > { %v1299_v27 = vpop.f32.mrf.mxu3  ;;  %v1036_v8 = vadd.f32 %v1002_v56, %v740_v58  ;;  %v1810_v41 = vpop.f32.mrf.mxu1  ;;  %v3322_v58 = vld [vmem:[%s3583_s29 + $0x110] sm:$0xff] }
 0x1d4   : > { %v1906_v50 = vadd.f32 %v1810_v41, %v4271_v9  ;;  %v3321_v9 = vld [vmem:[%s3583_s29 + $0x108] sm:$0xff]  ;;  %v2297_v20 = vrot.slane %v3322_v58, 1 }
 0x1d5   : > { %v1333_v18 = vadd.f32 %v1299_v27, %v1036_v8  ;;  %v2589_v27 = vsel %vm742_vm3, %v2586_v21, %v2588_v59 }
 0x1d6   : > { %3278 = vmatmul.msk.f32.gmra.mxu1 %vm380_vm2, %v4284_v55  ;;  %v2711_v29 = vpop.f32.mrf.mxu0 }
 0x1d7   : > { %v4718_v19 = vadd.f32 %v1609_v44, %v1333_v18  ;;  %3360 = vmatmul.msk.f32.gmra.mxu2 %vm380_vm2, %v3318_v32  ;;  %v1688_v32 = vsel %vm742_vm3, %v4278_v40, %v1687_v33  ;;  %v2296_v40 = vrot.slane %v3321_v9, 1  ;;  %v2591_v18 = vrot.slane %v3322_v58, 2  ;;  %v3323_v33 = vld [vmem:[%s3583_s29 + $0x118] sm:$0x3] }
 0x1d8   : > { %3394 = vmatmul.msk.f32.gmra.mxu3 %vm380_vm2, %v2293_v34 }
 0x1d9   : > { %3428 = vmatmul.msk.f32.gmra.mxu0 %vm380_vm2, %v2587_v43 }
 0x1da   : > { %v2107_v55 = vpop.f32.mrf.mxu2 }
 0x1db   : > { %v2417_v10 = vpop.f32.mrf.mxu3  ;;  %v2203_v42 = vadd.f32 %v2107_v55, %v1906_v50  ;;  %v1813_v44 = vpop.f32.mrf.mxu1 }
 0x1dc   : > { %v1907_v8 = vadd.f32 %v1813_v44, %v4288_v35  ;;  %v2298_v35 = vsel %vm297_vm1, %v2296_v40, %v2297_v20 }
 0x1dd   : > { %v2513_v11 = vadd.f32 %v2417_v10, %v2203_v42  ;;  %v3481_v10 = vld [vmem:[%s3583_s29 + $0x100] sm:$0x3]  ;;  %v2299_v42 = vrot.slane %v3323_v33, 1 }
 0x1de   : > { %3279 = vmatmul.msk.f32.gmra.mxu1 %vm380_vm2, %v1688_v32  ;;  %v2714_v56 = vpop.f32.mrf.mxu0  ;;  %v1692_v59 = vrot.slane %v3481_v10, 2  ;;  %v3326_v10 = vld [vmem:[%s3583_s29 + $0x130] sm:$0x3] }
 0x1df   : > { %v2807_v36 = vadd.f32 %v2711_v29, %v2513_v11  ;;  %3361 = vmatmul.msk.f32.gmra.mxu2 %vm380_vm2, %v3319_v4  ;;  %v2590_v4 = vrot.slane %v3321_v9, 2  ;;  %v2593_v11 = vrot.slane %v3323_v33, 2  ;;  %v2300_v40 = vsel %vm297_vm1, %v2297_v20, %v2299_v42 }
 0x1e0   : > { %3395 = vmatmul.msk.f32.gmra.mxu3 %vm380_vm2, %v2295_v22 }
 0x1e1   : > { %v2842_v41 = vadd.f32 %v4731_v47, %v2807_v36  ;;  %3429 = vmatmul.msk.f32.gmra.mxu0 %vm380_vm2, %v2589_v27  ;;  %v2592_v50 = vsel %vm742_vm3, %v2590_v4, %v2591_v18  ;;  %v1693_v36 = vsel %vm742_vm3, %v4312_v31, %v1692_v59 }
 0x1e2   : > { %v2110_v21 = vpop.f32.mrf.mxu2 }
 0x1e3   : > { %v2420_v34 = vpop.f32.mrf.mxu3  ;;  %v2874_v7 = vmax.f32 %v2842_v41, 0.0  ;;  %v2204_v29 = vadd.f32 %v2110_v21, %v1907_v8  ;;  %v1816_v43 = vpop.f32.mrf.mxu1  ;;  %v3324_v41 = vld [vmem:[%s3583_s29 + $0x120] sm:$0xff] }
 0x1e4   : > { %v1908_v44 = vadd.f32 %v1816_v43, %v4305_v2  ;;  %v3325_v2 = vld [vmem:[%s3583_s29 + $0x128] sm:$0xff]  ;;  %v2301_v31 = vrot.slane %v3324_v41, 1 }
 0x1e5   : > { %2906 = vst.msk [vmem:[%s4746_s20] sm:$0xff] %vm380_vm2, %v2874_v7  ;;  %v2514_v45 = vadd.f32 %v2420_v34, %v2204_v29  ;;  %v2594_v34 = vsel %vm742_vm3, %v2591_v18, %v2593_v11  ;;  %v2302_v7 = vrot.slane %v3325_v2, 1  ;;  %v2596_v18 = vrot.slane %v3325_v2, 2 }
 0x1e6   : > { %3280 = vmatmul.msk.f32.gmra.mxu1 %vm380_vm2, %v4318_v14  ;;  %v2717_v54 = vpop.f32.mrf.mxu0 }
 0x1e7   : > { %v2808_v55 = vadd.f32 %v2714_v56, %v2514_v45  ;;  %3362 = vmatmul.msk.f32.gmra.mxu2 %vm380_vm2, %v3321_v9  ;;  %v2595_v45 = vrot.slane %v3324_v41, 2 }
 0x1e8   : > { %3396 = vmatmul.msk.f32.gmra.mxu3 %vm380_vm2, %v2298_v35 }
 0x1e9   : > { %v2843_v32 = vadd.f32 %v4731_v47, %v2808_v55  ;;  %3430 = vmatmul.msk.f32.gmra.mxu0 %vm380_vm2, %v2592_v50  ;;  %v2597_v59 = vsel %vm742_vm3, %v2595_v45, %v2596_v18 }
 0x1ea   : > { %v2113_v14 = vpop.f32.mrf.mxu2 }
 0x1eb   : > { %v2423_v22 = vpop.f32.mrf.mxu3  ;;  %v2875_v56 = vmax.f32 %v2843_v32, 0.0  ;;  %v2205_v27 = vadd.f32 %v2113_v14, %v1908_v44  ;;  %v1819_v9 = vpop.f32.mrf.mxu1  ;;  %v3482_v44 = vld [vmem:[%s3583_s29 + $0x118] sm:$0x3]  ;;  %v2304_v14 = vrot.slane %v3326_v10, 1 }
 0x1ec   : > { %v1909_v20 = vadd.f32 %v1819_v9, %v4322_v15  ;;  %v1697_v32 = vrot.slane %v3482_v44, 2 }
 0x1ed   : > { %2907 = vst.msk [vmem:[%s4746_s20 + $0x8] sm:$0xff] %vm380_vm2, %v2875_v56  ;;  %v2515_v8 = vadd.f32 %v2423_v22, %v2205_v27  ;;  %v2598_v27 = vrot.slane %v3326_v10, 2 }
 0x1ee   : > { %3281 = vmatmul.msk.f32.gmra.mxu1 %vm380_vm2, %v1693_v36  ;;  %v2720_v21 = vpop.f32.mrf.mxu0 }
 0x1ef   : > { %v2809_v4 = vadd.f32 %v2717_v54, %v2515_v8  ;;  %3363 = vmatmul.msk.f32.gmra.mxu2 %vm380_vm2, %v3322_v58  ;;  %v2303_v58 = vsel %vm297_vm1, %v2301_v31, %v2302_v7  ;;  %v1698_v8 = vsel %vm742_vm3, %v4347_v23, %v1697_v32  ;;  %v2599_v31 = vsel %vm742_vm3, %v2596_v18, %v2598_v27  ;;  %v3329_v32 = vld [vmem:[%s3583_s29 + $0x148] sm:$0x3] }
 0x1f0   : > { %3397 = vmatmul.msk.f32.gmra.mxu3 %vm380_vm2, %v2300_v40 }
 0x1f1   : > { %v2844_v29 = vadd.f32 %v4731_v47, %v2809_v4  ;;  %3431 = vmatmul.msk.f32.gmra.mxu0 %vm380_vm2, %v2594_v34  ;;  %v3328_v34 = vld [vmem:[%s3583_s29 + $0x140] sm:$0xff] }
 0x1f2   : > { %v2116_v43 = vpop.f32.mrf.mxu2 }
 0x1f3   : > { %v2426_v35 = vpop.f32.mrf.mxu3  ;;  %v2876_v33 = vmax.f32 %v2844_v29, 0.0  ;;  %v2206_v54 = vadd.f32 %v2116_v43, %v1909_v20  ;;  %v1822_v50 = vpop.f32.mrf.mxu1  ;;  %v3483_v20 = vld [vmem:[%s3583_s29 + $0x128] sm:$0xff] }
 0x1f4   : > { %v1910_v22 = vadd.f32 %v1822_v50, %v4339_v53  ;;  %v3327_v53 = vld [vmem:[%s3583_s29 + $0x138] sm:$0xff]  ;;  %v1700_v29 = vrot.slane %v3483_v20, 2 }
 0x1f5   : > { %2908 = vst.msk [vmem:[%s4746_s20 + $0x10] sm:$0xff] %vm380_vm2, %v2876_v33  ;;  %v2516_v55 = vadd.f32 %v2426_v35, %v2206_v54  ;;  %v2306_v23 = vrot.slane %v3327_v53, 1  ;;  %v5154_v35 = vld [vmem:[#allocation16_spill] sm:$0xff]  ;;  %v2600_v18 = vrot.slane %v3327_v53, 2 }
 0x1f6   : > { %3282 = vmatmul.msk.f32.gmra.mxu1 %vm380_vm2, %v4353_v0  ;;  %v2723_v15 = vpop.f32.mrf.mxu0 }
 0x1f7   : > { %v2810_v42 = vadd.f32 %v2720_v21, %v2516_v55  ;;  %3364 = vmatmul.msk.f32.gmra.mxu2 %vm380_vm2, %v3324_v41  ;;  %v2305_v41 = vsel %vm297_vm1, %v2302_v7, %v2304_v14  ;;  %v2307_v7 = vrot.slane %v3328_v34, 1 }
 0x1f8   : > { %3398 = vmatmul.msk.f32.gmra.mxu3 %vm380_vm2, %v2303_v58  ;;  %v2601_v58 = vrot.slane %v3328_v34, 2 }
 0x1f9   : > { %v2845_v11 = vadd.f32 %v4731_v47, %v2810_v42  ;;  %3432 = vmatmul.msk.f32.gmra.mxu0 %vm380_vm2, %v2597_v59  ;;  %v2308_v42 = vsel %vm297_vm1, %v2306_v23, %v2307_v7  ;;  %v3331_v23 = vld [vmem:[%s3583_s29 + $0x158] sm:$0xff] }
 0x1fa   : > { %v2119_v0 = vpop.f32.mrf.mxu2 }
 0x1fb   : > { %v2429_v56 = vpop.f32.mrf.mxu3  ;;  %v2877_v9 = vmax.f32 %v2845_v11, 0.0  ;;  %v2207_v36 = vadd.f32 %v2119_v0, %v1910_v22  ;;  %v1825_v40 = vpop.f32.mrf.mxu1  ;;  %v2602_v22 = vsel %vm742_vm3, %v2600_v18, %v2601_v58 }
 0x1fc   : > { %v1911_v45 = vadd.f32 %v1825_v40, %v5154_v35 }
 0x1fd   : > { %2909 = vst.msk [vmem:[%s4746_s20 + $0x18] sm:$0xff] %vm380_vm2, %v2877_v9  ;;  %v2517_v21 = vadd.f32 %v2429_v56, %v2207_v36  ;;  %v2309_v56 = vrot.slane %v3329_v32, 1 }
 0x1fe   : > { %3283 = vmatmul.msk.f32.gmra.mxu1 %vm380_vm2, %v1698_v8  ;;  %v2726_v4 = vpop.f32.mrf.mxu0  ;;  %v2603_v8 = vrot.slane %v3329_v32, 2 }
 0x1ff   : > { %v2811_v43 = vadd.f32 %v2723_v15, %v2517_v21  ;;  %3365 = vmatmul.msk.f32.gmra.mxu2 %vm380_vm2, %v3325_v2  ;;  %v5155_v15 = vrot.slane %v5114_v6, 2  ;;  %v3484_v6 = vld [vmem:[%s3583_s29 + $0x130] sm:$0x3] }
 0x200   : > { %3399 = vmatmul.msk.f32.gmra.mxu3 %vm380_vm2, %v2305_v41  ;;  %v1702_v0 = vrot.slane %v3484_v6, 2  ;;  %v2604_v35 = vsel %vm742_vm3, %v2601_v58, %v2603_v8  ;;  %v2606_v58 = vrot.slane %v3331_v23, 2 }
 0x201   : > { %v2846_v33 = vadd.f32 %v4731_v47, %v2811_v43  ;;  %3433 = vmatmul.msk.f32.gmra.mxu0 %vm380_vm2, %v2599_v31  ;;  %v1701_v59 = vsel %vm742_vm3, %v5155_v15, %v1700_v29  ;;  %v2310_v31 = vsel %vm297_vm1, %v2307_v7, %v2309_v56  ;;  %v3330_v43 = vld [vmem:[%s3583_s29 + $0x150] sm:$0xff]  ;;  %v5156_v7 = vld [vmem:[#allocation14_spill] sm:$0xff] }
 0x202   : > { %v2122_v54 = vpop.f32.mrf.mxu2 }
 0x203   : > { %v2432_v50 = vpop.f32.mrf.mxu3  ;;  %v2878_v55 = vmax.f32 %v2846_v33, 0.0  ;;  %v2208_v10 = vadd.f32 %v2122_v54, %v1911_v45  ;;  %v1828_v2 = vpop.f32.mrf.mxu1  ;;  %v2312_v33 = vrot.slane %v3331_v23, 1 }
 0x204   : > { %v1912_v27 = vadd.f32 %v1828_v2, %v4375_v48 }
 0x205   : > { %2910 = vst.msk [vmem:[%s4746_s20 + $0x20] sm:$0xff] %vm380_vm2, %v2878_v55  ;;  %v2518_v44 = vadd.f32 %v2432_v50, %v2208_v10  ;;  %v2605_v10 = vrot.slane %v3330_v43, 2 }
 0x206   : > { %3284 = vmatmul.msk.f32.gmra.mxu1 %vm380_vm2, %v1701_v59  ;;  %v2729_v14 = vpop.f32.mrf.mxu0 }
 0x207   : > { %v2812_v11 = vadd.f32 %v2726_v4, %v2518_v44  ;;  %3366 = vmatmul.msk.f32.gmra.mxu2 %vm380_vm2, %v3327_v53  ;;  %v1703_v4 = vsel %vm742_vm3, %v1700_v29, %v1702_v0  ;;  %v2311_v29 = vrot.slane %v3330_v43, 1  ;;  %v3332_v44 = vld [vmem:[%s3583_s29 + $0x160] sm:$0x3] }
 0x208   : > { %3400 = vmatmul.msk.f32.gmra.mxu3 %vm380_vm2, %v2308_v42  ;;  %v2314_v0 = vrot.slane %v3332_v44, 1 }
 0x209   : > { %v2847_v9 = vadd.f32 %v4731_v47, %v2812_v11  ;;  %3434 = vmatmul.msk.f32.gmra.mxu0 %vm380_vm2, %v2602_v22  ;;  %v3485_v11 = vld [vmem:[%s3583_s29 + $0x148] sm:$0x3] }
 0x20a   : > { %v2125_v36 = vpop.f32.mrf.mxu2  ;;  %v1707_v6 = vrot.slane %v3485_v11, 2 }
 0x20b   : > { %v2435_v40 = vpop.f32.mrf.mxu3  ;;  %v2879_v41 = vmax.f32 %v2847_v9, 0.0  ;;  %v2209_v21 = vadd.f32 %v2125_v36, %v1912_v27  ;;  %v1831_v53 = vpop.f32.mrf.mxu1  ;;  %v2608_v36 = vrot.slane %v3332_v44, 2 }
 0x20c   : > { %v1913_v54 = vadd.f32 %v1831_v53, %v5156_v7  ;;  %v2315_v53 = vsel %vm297_vm1, %v2312_v33, %v2314_v0 }
 0x20d   : > { %2911 = vst.msk [vmem:[%s4746_s20 + $0x28] sm:$0xff] %vm380_vm2, %v2879_v41  ;;  %v2519_v20 = vadd.f32 %v2435_v40, %v2209_v21  ;;  %v1708_v21 = vsel %vm742_vm3, %v4410_v37, %v1707_v6 }
 0x20e   : > { %3285 = vmatmul.msk.f32.gmra.mxu1 %vm380_vm2, %v1703_v4  ;;  %v2732_v48 = vpop.f32.mrf.mxu0 }
 0x20f   : > { %v2813_v45 = vadd.f32 %v2729_v14, %v2519_v20  ;;  %3367 = vmatmul.msk.f32.gmra.mxu2 %vm380_vm2, %v3328_v34  ;;  %v2313_v34 = vsel %vm297_vm1, %v2311_v29, %v2312_v33  ;;  %v2607_v14 = vsel %vm742_vm3, %v2605_v10, %v2606_v58  ;;  %v3486_v33 = vld [vmem:[%s3583_s29 + $0x180] sm:$0xff] }
 0x210   : > { %3401 = vmatmul.msk.f32.gmra.mxu3 %vm380_vm2, %v2310_v31  ;;  %v3334_v31 = vld [vmem:[%s3583_s29 + $0x170] sm:$0xff]  ;;  %v1719_v7 = vrot.slane %v3486_v33, 2 }
 0x211   : > { %v2848_v50 = vadd.f32 %v4731_v47, %v2813_v45  ;;  %3435 = vmatmul.msk.f32.gmra.mxu0 %vm380_vm2, %v2604_v35  ;;  %v2317_v35 = vrot.slane %v3334_v31, 1  ;;  %v2611_v10 = vrot.slane %v3334_v31, 2 }
 0x212   : > { %v2128_v18 = vpop.f32.mrf.mxu2 }
 0x213   : > { %v2438_v55 = vpop.f32.mrf.mxu3  ;;  %v2880_v2 = vmax.f32 %v2848_v50, 0.0  ;;  %v2210_v15 = vadd.f32 %v2128_v18, %v1913_v54  ;;  %v1834_v59 = vpop.f32.mrf.mxu1  ;;  %v4860_v54 = vld [vmem:[%s3583_s29 + $0x188] sm:$0xff] }
 0x214   : > { %v1914_v56 = vadd.f32 %v1834_v59, %v4403_v16  ;;  %v3333_v16 = vld [vmem:[%s3583_s29 + $0x168] sm:$0xff]  ;;  %v1720_v50 = vrot.slane %v4860_v54, 2 }
 0x215   : > { %2912 = vst.msk [vmem:[%s4746_s20 + $0x30] sm:$0xff] %vm380_vm2, %v2880_v2  ;;  %v2520_v42 = vadd.f32 %v2438_v55, %v2210_v15  ;;  %v2316_v37 = vrot.slane %v3333_v16, 1  ;;  %v2610_v55 = vrot.slane %v3333_v16, 2 }
 0x216   : > { %3286 = vmatmul.msk.f32.gmra.mxu1 %vm380_vm2, %v4416_v38  ;;  %v2735_v32 = vpop.f32.mrf.mxu0 }
 0x217   : > { %v2814_v22 = vadd.f32 %v2732_v48, %v2520_v42  ;;  %3368 = vmatmul.msk.f32.gmra.mxu2 %vm380_vm2, %v3330_v43  ;;  %v2609_v43 = vsel %vm742_vm3, %v2606_v58, %v2608_v36  ;;  %v2612_v44 = vsel %vm742_vm3, %v2610_v55, %v2611_v10 }
 0x218   : > { %3402 = vmatmul.msk.f32.gmra.mxu3 %vm380_vm2, %v2313_v34  ;;  %v3335_v34 = vld [vmem:[%s3583_s29 + $0x178] sm:$0x3] }
 0x219   : > { %v2849_v27 = vadd.f32 %v4731_v47, %v2814_v22  ;;  %3436 = vmatmul.msk.f32.gmra.mxu0 %vm380_vm2, %v2607_v14  ;;  %v3488_v22 = vld [vmem:[%s3583_s29 + $0x160] sm:$0x3]  ;;  %v2319_v6 = vrot.slane %v3335_v34, 1 }
 0x21a   : > { %v2131_v38 = vpop.f32.mrf.mxu2  ;;  %v1712_v11 = vrot.slane %v3488_v22, 2 }
 0x21b   : > { %v2441_v9 = vpop.f32.mrf.mxu3  ;;  %v2881_v40 = vmax.f32 %v2849_v27, 0.0  ;;  %v2211_v8 = vadd.f32 %v2131_v38, %v1914_v56  ;;  %v1837_v41 = vpop.f32.mrf.mxu1  ;;  %v2613_v38 = vrot.slane %v3335_v34, 2 }
 0x21c   : > { %v1915_v45 = vadd.f32 %v1837_v41, %v4420_v51  ;;  %v2318_v51 = vsel %vm297_vm1, %v2316_v37, %v2317_v35 }
 0x21d   : > { %2913 = vst.msk [vmem:[%s4746_s20 + $0x38] sm:$0xff] %vm380_vm2, %v2881_v40  ;;  %v2521_v4 = vadd.f32 %v2441_v9, %v2211_v8  ;;  %v5157_v8 = vld [vmem:[#allocation20_spill] sm:$0xff] }
 0x21e   : > { %3287 = vmatmul.msk.f32.gmra.mxu1 %vm380_vm2, %v1708_v21  ;;  %v2738_v20 = vpop.f32.mrf.mxu0  ;;  %v1713_v41 = vsel %vm742_vm3, %v5157_v8, %v1712_v11  ;;  %v2320_v21 = vsel %vm297_vm1, %v2317_v35, %v2319_v6  ;;  %v5158_v35 = vld [vmem:[#allocation17_spill] sm:$0xff]  ;;  %v5160_v11 = vld [vmem:[#allocation2_spill] sm:$0xff] }
 0x21f   : > { %v2815_v48 = vadd.f32 %v2735_v32, %v2521_v4  ;;  %3369 = vmatmul.msk.f32.gmra.mxu2 %vm380_vm2, %v3331_v23  ;;  %v4873_v32 = vsel %vm742_vm3, %v1719_v7, %v1720_v50  ;;  %v3336_v4 = vld [vmem:[%s3583_s29 + $0x180] sm:$0xff] }
 0x220   : > { %3403 = vmatmul.msk.f32.gmra.mxu3 %vm380_vm2, %v2315_v53 }
 0x221   : > { %v2850_v29 = vadd.f32 %v4731_v47, %v2815_v48  ;;  %3437 = vmatmul.msk.f32.gmra.mxu0 %vm380_vm2, %v2609_v43  ;;  %v2321_v48 = vrot.slane %v3336_v4, 1 }
 0x222   : > { %v2134_v18 = vpop.f32.mrf.mxu2 }
 0x223   : > { %v2444_v23 = vpop.f32.mrf.mxu3  ;;  %v2882_v58 = vmax.f32 %v2850_v29, 0.0  ;;  %v2212_v2 = vadd.f32 %v2134_v18, %v1915_v45  ;;  %v1840_v15 = vpop.f32.mrf.mxu1  ;;  %v2615_v18 = vrot.slane %v3336_v4, 2 }
 0x225   : > { %2914 = vst.msk [vmem:[%s4746_s20 + $0x40] sm:$0xff] %vm380_vm2, %v2882_v58  ;;  %v2522_v59 = vadd.f32 %v2444_v23, %v2212_v2 }
 0x226   : > { %3288 = vmatmul.msk.f32.gmra.mxu1 %vm380_vm2, %v4450_v52  ;;  %v2741_v42 = vpop.f32.mrf.mxu0  ;;  %v1916_v52 = vadd.f32 %v1840_v15, %v4437_v30  ;;  %v3337_v30 = vld [vmem:[%s3583_s29 + $0x188] sm:$0xff]  ;;  %v3338_v15 = vld [vmem:[%s3583_s29 + $0x190] sm:$0x3] }
 0x227   : > { %v2816_v14 = vadd.f32 %v2738_v20, %v2522_v59  ;;  %3370 = vmatmul.msk.f32.gmra.mxu2 %vm380_vm2, %v3333_v16  ;;  %v2614_v20 = vsel %vm742_vm3, %v2611_v10, %v2613_v38  ;;  %v2322_v37 = vrot.slane %v3337_v30, 1  ;;  %v2616_v23 = vrot.slane %v3337_v30, 2 }
 0x228   : > { %3404 = vmatmul.msk.f32.gmra.mxu3 %vm380_vm2, %v2318_v51  ;;  %v5159_v51 = vld [vmem:[#allocation22_spill] sm:$0xff]  ;;  %v2324_v22 = vrot.slane %v3338_v15, 1 }
 0x229   : > { %v2851_v0 = vadd.f32 %v4731_v47, %v2816_v14  ;;  %3438 = vmatmul.msk.f32.gmra.mxu0 %vm380_vm2, %v2612_v44  ;;  %v2617_v34 = vsel %vm742_vm3, %v2615_v18, %v2616_v23  ;;  %v3489_v44 = vld [vmem:[%s3583_s29 + $0x178] sm:$0x3] }
 0x22a   : > { %v2137_v56 = vpop.f32.mrf.mxu2  ;;  %v1717_v14 = vrot.slane %v3489_v44, 2  ;;  %v2325_v8 = vsel %vm297_vm1, %v2322_v37, %v2324_v22 }
 0x22b   : > { %v2447_v27 = vpop.f32.mrf.mxu3  ;;  %v2883_v9 = vmax.f32 %v2851_v0, 0.0  ;;  %v2213_v36 = vadd.f32 %v2137_v56, %v1916_v52  ;;  %v1843_v40 = vpop.f32.mrf.mxu1 }
 0x22c   : > { %v1917_v45 = vadd.f32 %v1843_v40, %v5158_v35  ;;  %v1718_v40 = vsel %vm742_vm3, %v4479_v39, %v1717_v14 }
 0x22d   : > { %2915 = vst.msk [vmem:[%s4746_s20 + $0x48] sm:$0xff] %vm380_vm2, %v2883_v9  ;;  %v2523_v53 = vadd.f32 %v2447_v27, %v2213_v36  ;;  %v2618_v27 = vrot.slane %v3338_v15, 2 }
 0x22e   : > { %3289 = vmatmul.msk.f32.gmra.mxu1 %vm380_vm2, %v1713_v41  ;;  %v2744_v16 = vpop.f32.mrf.mxu0 }
 0x22f   : > { %v2817_v43 = vadd.f32 %v2741_v42, %v2523_v53  ;;  %3371 = vmatmul.msk.f32.gmra.mxu2 %vm380_vm2, %v3334_v31  ;;  %v2323_v31 = vsel %vm297_vm1, %v2321_v48, %v2322_v37  ;;  %v3340_v53 = vld [vmem:[%s3583_s29 + $0x1a0] sm:$0xff]  ;;  %v5161_v48 = vld [vmem:[#allocation3_spill] sm:$0xff] }
 0x230   : > { %3405 = vmatmul.msk.f32.gmra.mxu3 %vm380_vm2, %v2320_v21  ;;  %v3339_v21 = vld [vmem:[%s3583_s29 + $0x198] sm:$0xff] }
 0x231   : > { %v2852_v29 = vadd.f32 %v4731_v47, %v2817_v43  ;;  %3439 = vmatmul.msk.f32.gmra.mxu0 %vm380_vm2, %v2614_v20  ;;  %v2326_v39 = vrot.slane %v3339_v21, 1  ;;  %v2327_v43 = vrot.slane %v3340_v53, 1 }
 0x232   : > { %v2140_v33 = vpop.f32.mrf.mxu2 }
 0x233   : > { %v2450_v7 = vpop.f32.mrf.mxu3  ;;  %v2884_v55 = vmax.f32 %v2852_v29, 0.0  ;;  %v2214_v10 = vadd.f32 %v2140_v33, %v1917_v45  ;;  %v1846_v58 = vpop.f32.mrf.mxu1  ;;  %v2620_v33 = vrot.slane %v3339_v21, 2 }
 0x234   : > { %v1918_v6 = vadd.f32 %v1846_v58, %v5160_v11  ;;  %v3341_v58 = vld [vmem:[%s3583_s29 + $0x1a8] sm:$0x3] }
 0x235   : > { %2916 = vst.msk [vmem:[%s4746_s20 + $0x50] sm:$0xff] %vm380_vm2, %v2884_v55  ;;  %v2524_v2 = vadd.f32 %v2450_v7, %v2214_v10  ;;  %v2621_v7 = vrot.slane %v3340_v53, 2  ;;  %v2623_v22 = vrot.slane %v3341_v58, 2 }
 0x236   : > { %3290 = vmatmul.msk.f32.gmra.mxu1 %vm380_vm2, %v5159_v51  ;;  %v2747_v59 = vpop.f32.mrf.mxu0  ;;  %v3490_v51 = vld [vmem:[%s3583_s29 + $0x190] sm:$0x3] }
 0x237   : > { %v2818_v42 = vadd.f32 %v2744_v16, %v2524_v2  ;;  %3372 = vmatmul.msk.f32.gmra.mxu2 %vm380_vm2, %v3336_v4  ;;  %v2619_v16 = vsel %vm742_vm3, %v2616_v23, %v2618_v27  ;;  %v2622_v2 = vsel %vm742_vm3, %v2620_v33, %v2621_v7 }
 0x238   : > { %3406 = vmatmul.msk.f32.gmra.mxu3 %vm380_vm2, %v2323_v31 }
 0x239   : > { %v2853_v52 = vadd.f32 %v4731_v47, %v2818_v42  ;;  %3440 = vmatmul.msk.f32.gmra.mxu0 %vm380_vm2, %v2617_v34  ;;  %v2329_v34 = vrot.slane %v3341_v58, 1 }
 0x23a   : > { %v2143_v0 = vpop.f32.mrf.mxu2 }
 0x23b   : > { %v2453_v56 = vpop.f32.mrf.mxu3  ;;  %v2885_v38 = vmax.f32 %v2853_v52, 0.0  ;;  %v2215_v9 = vadd.f32 %v2143_v0, %v1918_v6  ;;  %v1849_v36 = vpop.f32.mrf.mxu1 }
 0x23c   : > { %v1919_v37 = vadd.f32 %v1849_v36, %v5161_v48 }
 0x23d   : > { %2917 = vst.msk [vmem:[%s4746_s20 + $0x58] sm:$0xff] %vm380_vm2, %v2885_v38  ;;  %v2525_v41 = vadd.f32 %v2453_v56, %v2215_v9  ;;  %v2330_v56 = vsel %vm297_vm1, %v2327_v43, %v2329_v34  ;;  %v2624_v38 = vsel %vm742_vm3, %v2621_v7, %v2623_v22 }
 0x23e   : > { %3291 = vmatmul.msk.f32.gmra.mxu1 %vm380_vm2, %v1718_v40  ;;  %v2750_v4 = vpop.f32.mrf.mxu0 }
 0x23f   : > { %v2819_v20 = vadd.f32 %v2747_v59, %v2525_v41  ;;  %3373 = vmatmul.msk.f32.gmra.mxu2 %vm380_vm2, %v3337_v30  ;;  %v2328_v30 = vsel %vm297_vm1, %v2326_v39, %v2327_v43  ;;  %v1722_v59 = vrot.slane %v3490_v51, 2 }
 0x240   : > { %3407 = vmatmul.msk.f32.gmra.mxu3 %vm380_vm2, %v2325_v8 }
 0x241   : > { %v2854_v35 = vadd.f32 %v4731_v47, %v2819_v20  ;;  %3441 = vmatmul.msk.f32.gmra.mxu0 %vm380_vm2, %v2619_v16  ;;  %v1723_v0 = vsel %vm742_vm3, %v1720_v50, %v1722_v59 }
 0x242   : > { %v2146_v45 = vpop.f32.mrf.mxu2 }
 0x243   : > { %v2456_v29 = vpop.f32.mrf.mxu3  ;;  %v2886_v18 = vmax.f32 %v2854_v35, 0.0  ;;  %v2216_v23 = vadd.f32 %v2146_v45, %v1919_v37  ;;  %v1852_v55 = vpop.f32.mrf.mxu1 }
 0x244   : > { %v1920_v42 = vadd.f32 %v1852_v55, %v4507_v28 }
 0x245   : > { %2918 = vst.msk [vmem:[%s4746_s20 + $0x60] sm:$0xff] %vm380_vm2, %v2886_v18  ;;  %v2526_v10 = vadd.f32 %v2456_v29, %v2216_v23 }
 0x246   : > { %3292 = vmatmul.msk.f32.gmra.mxu1 %vm380_vm2, %v4873_v32  ;;  %v2753_v31 = vpop.f32.mrf.mxu0 }
 0x247   : > { %v2820_v15 = vadd.f32 %v2750_v4, %v2526_v10  ;;  %3374 = vmatmul.msk.f32.gmra.mxu2 %vm380_vm2, %v3339_v21 }
 0x248   : > { %3408 = vmatmul.msk.f32.gmra.mxu3 %vm380_vm2, %v2328_v30 }
 0x249   : > { %v2855_v44 = vadd.f32 %v4731_v47, %v2820_v15  ;;  %3442 = vmatmul.msk.f32.gmra.mxu0 %vm380_vm2, %v2622_v2 }
 0x24a   : > { %v2149_v14 = vpop.f32.mrf.mxu2 }
 0x24b   : > { %v2459_v32 = vpop.f32.mrf.mxu3  ;;  %v2887_v11 = vmax.f32 %v2855_v44, 0.0  ;;  %v2217_v6 = vadd.f32 %v2149_v14, %v1920_v42  ;;  %v1855_v52 = vpop.f32.mrf.mxu1 }
 0x24c   : > { %v1921_v54 = vadd.f32 %v1855_v52, %v4518_v63 }
 0x24d   : > { %2919 = vst.msk [vmem:[%s4746_s20 + $0x68] sm:$0xff] %vm380_vm2, %v2887_v11  ;;  %v2527_v28 = vadd.f32 %v2459_v32, %v2217_v6 }
 0x24e   : > { %3293 = vmatmul.msk.f32.gmra.mxu1 %vm380_vm2, %v1723_v0  ;;  %v2756_v27 = vpop.f32.mrf.mxu0 }
 0x24f   : > { %v2821_v9 = vadd.f32 %v2753_v31, %v2527_v28  ;;  %3375 = vmatmul.msk.f32.gmra.mxu2 %vm380_vm2, %v3340_v53 }
 0x250   : > { %3409 = vmatmul.msk.f32.gmra.mxu3 %vm380_vm2, %v2330_v56 }
 0x251   : > { %v2856_v50 = vadd.f32 %v4731_v47, %v2821_v9  ;;  %3443 = vmatmul.msk.f32.gmra.mxu0 %vm380_vm2, %v2624_v38 }
 0x252   : > { %v2152_v36 = vpop.f32.mrf.mxu2 }
 0x253   : > { %v2462_v40 = vpop.f32.mrf.mxu3  ;;  %v2888_v8 = vmax.f32 %v2856_v50, 0.0  ;;  %v2218_v41 = vadd.f32 %v2152_v36, %v1921_v54  ;;  %v1858_v21 = vpop.f32.mrf.mxu1 }
 0x254   : > { %v1922_v53 = vadd.f32 %v1858_v21, %v4532_v57 }
 0x255   : > { %2920 = vst.msk [vmem:[%s4746_s20 + $0x70] sm:$0xff] %vm380_vm2, %v2888_v8  ;;  %v2528_v4 = vadd.f32 %v2462_v40, %v2218_v41 }
 0x256   : > { %v2759_v16 = vpop.f32.mrf.mxu0 }
 0x257   : > { %v2822_v20 = vadd.f32 %v2756_v27, %v2528_v4 }
 0x259   : > { %v2857_v39 = vadd.f32 %v4731_v47, %v2822_v20 }
 0x25a   : > { %v2155_v63 = vpop.f32.mrf.mxu2 }
 0x25b   : > { %v2465_v43 = vpop.f32.mrf.mxu3  ;;  %v2889_v48 = vmax.f32 %v2857_v39, 0.0  ;;  %v2219_v37 = vadd.f32 %v2155_v63, %v1922_v53  ;;  %v1861_v35 = vpop.f32.mrf.mxu1 }
 0x25c   : > { %v1923_v7 = vadd.f32 %v1861_v35, %v4543_v12 }
 0x25d   : > { %2921 = vst.msk [vmem:[%s4746_s20 + $0x78] sm:$0xff] %vm380_vm2, %v2889_v48  ;;  %v2529_v45 = vadd.f32 %v2465_v43, %v2219_v37 }
 0x25e   : > { %v2762_v29 = vpop.f32.mrf.mxu0 }
 0x25f   : > { %v2823_v33 = vadd.f32 %v2759_v16, %v2529_v45 }
 0x261   : > { %v2858_v18 = vadd.f32 %v4731_v47, %v2823_v33 }
 0x262   : > { %v2158_v23 = vpop.f32.mrf.mxu2 }
 0x263   : > { %v2468_v57 = vpop.f32.mrf.mxu3  ;;  %v2890_v55 = vmax.f32 %v2858_v18, 0.0  ;;  %v2220_v30 = vadd.f32 %v2158_v23, %v1923_v7  ;;  %v1864_v10 = vpop.f32.mrf.mxu1 }
 0x264   : > { %v1924_v15 = vadd.f32 %v1864_v10, %v4557_v5 }
 0x265   : > { %2922 = vst.msk [vmem:[%s4746_s20 + $0x80] sm:$0xff] %vm380_vm2, %v2890_v55  ;;  %v2530_v58 = vadd.f32 %v2468_v57, %v2220_v30 }
 0x266   : > { %v2765_v31 = vpop.f32.mrf.mxu0 }
 0x267   : > { %v2824_v2 = vadd.f32 %v2762_v29, %v2530_v58 }
 0x269   : > { %v2859_v51 = vadd.f32 %v4731_v47, %v2824_v2 }
 0x26a   : > { %v2161_v59 = vpop.f32.mrf.mxu2 }
 0x26b   : > { %v2471_v12 = vpop.f32.mrf.mxu3  ;;  %v2891_v34 = vmax.f32 %v2859_v51, 0.0  ;;  %v2221_v42 = vadd.f32 %v2161_v59, %v1924_v15  ;;  %v1867_v44 = vpop.f32.mrf.mxu1 }
 0x26c   : > { %v1925_v11 = vadd.f32 %v1867_v44, %v4568_v61 }
 0x26d   : > { %2923 = vst.msk [vmem:[%s4746_s20 + $0x88] sm:$0xff] %vm380_vm2, %v2891_v34  ;;  %v2531_v14 = vadd.f32 %v2471_v12, %v2221_v42 }
 0x26e   : > { %v2768_v32 = vpop.f32.mrf.mxu0 }
 0x26f   : > { %v2825_v22 = vadd.f32 %v2765_v31, %v2531_v14 }
 0x271   : > { %v2860_v6 = vadd.f32 %v4731_v47, %v2825_v22 }
 0x272   : > { %v2164_v52 = vpop.f32.mrf.mxu2 }
 0x273   : > { %v2474_v5 = vpop.f32.mrf.mxu3  ;;  %v2892_v0 = vmax.f32 %v2860_v6, 0.0  ;;  %v2222_v56 = vadd.f32 %v2164_v52, %v1925_v11  ;;  %v1870_v28 = vpop.f32.mrf.mxu1 }
 0x274   : > { %v1926_v54 = vadd.f32 %v1870_v28, %v4582_v1 }
 0x275   : > { %2924 = vst.msk [vmem:[%s4746_s20 + $0x90] sm:$0xff] %vm380_vm2, %v2892_v0  ;;  %v2532_v27 = vadd.f32 %v2474_v5, %v2222_v56 }
 0x276   : > { %v2771_v38 = vpop.f32.mrf.mxu0 }
 0x277   : > { %v2826_v9 = vadd.f32 %v2768_v32, %v2532_v27 }
 0x279   : > { %v2861_v50 = vadd.f32 %v4731_v47, %v2826_v9 }
 0x27a   : > { %v2167_v36 = vpop.f32.mrf.mxu2 }
 0x27b   : > { %v2477_v61 = vpop.f32.mrf.mxu3  ;;  %v2893_v40 = vmax.f32 %v2861_v50, 0.0  ;;  %v2223_v8 = vadd.f32 %v2167_v36, %v1926_v54  ;;  %v1873_v41 = vpop.f32.mrf.mxu1 }
 0x27c   : > { %v1927_v20 = vadd.f32 %v1873_v41, %v4593_v62 }
 0x27d   : > { %2925 = vst.msk [vmem:[%s4746_s20 + $0x98] sm:$0xff] %vm380_vm2, %v2893_v40  ;;  %v2533_v21 = vadd.f32 %v2477_v61, %v2223_v8 }
 0x27e   : > { %v2774_v4 = vpop.f32.mrf.mxu0 }
 0x27f   : > { %v2827_v16 = vadd.f32 %v2771_v38, %v2533_v21 }
 0x281   : > { %v2862_v53 = vadd.f32 %v4731_v47, %v2827_v16 }
 0x282   : > { %v2170_v39 = vpop.f32.mrf.mxu2 }
 0x283   : > { %v2480_v1 = vpop.f32.mrf.mxu3  ;;  %v2894_v63 = vmax.f32 %v2862_v53, 0.0  ;;  %v2224_v43 = vadd.f32 %v2170_v39, %v1927_v20  ;;  %v1876_v48 = vpop.f32.mrf.mxu1 }
 0x284   : > { %v1928_v29 = vadd.f32 %v1876_v48, %v4607_v46 }
 0x285   : > { %2926 = vst.msk [vmem:[%s4746_s20 + $0xa0] sm:$0xff] %vm380_vm2, %v2894_v63  ;;  %v2534_v37 = vadd.f32 %v2480_v1, %v2224_v43 }
 0x286   : > { %v2777_v35 = vpop.f32.mrf.mxu0 }
 0x287   : > { %v2828_v45 = vadd.f32 %v2774_v4, %v2534_v37 }
 0x289   : > { %v2863_v33 = vadd.f32 %v4731_v47, %v2828_v45 }
 0x28a   : > { %v2173_v7 = vpop.f32.mrf.mxu2 }
 0x28b   : > { %v2483_v62 = vpop.f32.mrf.mxu3  ;;  %v2895_v18 = vmax.f32 %v2863_v33, 0.0  ;;  %v2225_v23 = vadd.f32 %v2173_v7, %v1928_v29  ;;  %v1879_v57 = vpop.f32.mrf.mxu1 }
 0x28c   : > { %v1929_v58 = vadd.f32 %v1879_v57, %v4618_v49 }
 0x28d   : > { %2927 = vst.msk [vmem:[%s4746_s20 + $0xa8] sm:$0xff] %vm380_vm2, %v2895_v18  ;;  %v2535_v55 = vadd.f32 %v2483_v62, %v2225_v23 }
 0x28e   : > { %v2780_v30 = vpop.f32.mrf.mxu0 }
 0x28f   : > { %v2829_v10 = vadd.f32 %v2777_v35, %v2535_v55 }
 0x291   : > { %v2864_v31 = vadd.f32 %v4731_v47, %v2829_v10 }
 0x292   : > { %v2176_v2 = vpop.f32.mrf.mxu2 }
 0x293   : > { %v2486_v46 = vpop.f32.mrf.mxu3  ;;  %v2896_v15 = vmax.f32 %v2864_v31, 0.0  ;;  %v2226_v51 = vadd.f32 %v2176_v2, %v1929_v58  ;;  %v1882_v59 = vpop.f32.mrf.mxu1 }
 0x294   : > { %v1930_v44 = vadd.f32 %v1882_v59, %v4632_v25 }
 0x295   : > { %2928 = vst.msk [vmem:[%s4746_s20 + $0xb0] sm:$0xff] %vm380_vm2, %v2896_v15  ;;  %v2536_v12 = vadd.f32 %v2486_v46, %v2226_v51 }
 0x296   : > { %v2783_v34 = vpop.f32.mrf.mxu0 }
 0x297   : > { %v2830_v42 = vadd.f32 %v2780_v30, %v2536_v12 }
 0x299   : > { %v2865_v14 = vadd.f32 %v4731_v47, %v2830_v42 }
 0x29a   : > { %v2179_v32 = vpop.f32.mrf.mxu2 }
 0x29b   : > { %v2489_v49 = vpop.f32.mrf.mxu3  ;;  %v2897_v22 = vmax.f32 %v2865_v14, 0.0  ;;  %v2227_v11 = vadd.f32 %v2179_v32, %v1930_v44  ;;  %v1885_v6 = vpop.f32.mrf.mxu1 }
 0x29c   : > { %v1931_v56 = vadd.f32 %v1885_v6, %v4643_v24 }
 0x29d   : > { %2929 = vst.msk [vmem:[%s4746_s20 + $0xb8] sm:$0xff] %vm380_vm2, %v2897_v22  ;;  %v2537_v52 = vadd.f32 %v2489_v49, %v2227_v11 }
 0x29e   : > { %v2786_v5 = vpop.f32.mrf.mxu0 }
 0x29f   : > { %v2831_v0 = vadd.f32 %v2783_v34, %v2537_v52 }
 0x2a1   : > { %v2866_v28 = vadd.f32 %v4731_v47, %v2831_v0 }
 0x2a2   : > { %v2182_v27 = vpop.f32.mrf.mxu2 }
 0x2a3   : > { %v2492_v25 = vpop.f32.mrf.mxu3  ;;  %v2898_v38 = vmax.f32 %v2866_v28, 0.0  ;;  %v2228_v9 = vadd.f32 %v2182_v27, %v1931_v56  ;;  %v1888_v54 = vpop.f32.mrf.mxu1 }
 0x2a4   : > { %v1932_v40 = vadd.f32 %v1888_v54, %v4657_v17  ;;  %v3491_v54 = vld [vmem:[%s5030_s2] ss:$0 sm:$0xff] }
 0x2a5   : > { %2930 = vst.msk [vmem:[%s4746_s20 + $0xc0] sm:$0xff] %vm380_vm2, %v2898_v38  ;;  %v2538_v50 = vadd.f32 %v2492_v25, %v2228_v9 }
 0x2a6   : > { %v2789_v36 = vpop.f32.mrf.mxu0 }
 0x2a7   : > { %v2832_v61 = vadd.f32 %v2786_v5, %v2538_v50 }
 0x2a9   : > { %v2867_v8 = vadd.f32 %v4731_v47, %v2832_v61 }
 0x2aa   : > { %v2185_v41 = vpop.f32.mrf.mxu2 }
 0x2ab   : > { %v2495_v24 = vpop.f32.mrf.mxu3  ;;  %v2899_v21 = vmax.f32 %v2867_v8, 0.0  ;;  %v2229_v4 = vadd.f32 %v2185_v41, %v1932_v40  ;;  %v1891_v16 = vpop.f32.mrf.mxu1 }
 0x2ac   : > { %v1933_v1 = vadd.f32 %v1891_v16, %v4668_v60 }
 0x2ad   : > { %2931 = vst.msk [vmem:[%s4746_s20 + $0xc8] sm:$0xff] %vm380_vm2, %v2899_v21  ;;  %v2539_v20 = vadd.f32 %v2495_v24, %v2229_v4 }
 0x2ae   : > { %v2792_v53 = vpop.f32.mrf.mxu0 }
 0x2af   : > { %v2833_v39 = vadd.f32 %v2789_v36, %v2539_v20 }
 0x2b1   : > { %v2868_v63 = vadd.f32 %v4731_v47, %v2833_v39 }
 0x2b2   : > { %v2188_v43 = vpop.f32.mrf.mxu2 }
 0x2b3   : > { %v2498_v17 = vpop.f32.mrf.mxu3  ;;  %v2900_v48 = vmax.f32 %v2868_v63, 0.0  ;;  %v2230_v37 = vadd.f32 %v2188_v43, %v1933_v1  ;;  %v1894_v35 = vpop.f32.mrf.mxu1 }
 0x2b4   : > { %v1934_v7 = vadd.f32 %v1894_v35, %v4682_v3 }
 0x2b5   : > { %2932 = vst.msk [vmem:[%s4746_s20 + $0xd0] sm:$0xff] %vm380_vm2, %v2900_v48  ;;  %v2540_v45 = vadd.f32 %v2498_v17, %v2230_v37 }
 0x2b6   : > { %v2795_v29 = vpop.f32.mrf.mxu0 }
 0x2b7   : > { %v2834_v33 = vadd.f32 %v2792_v53, %v2540_v45 }
 0x2b9   : > { %v2869_v62 = vadd.f32 %v4731_v47, %v2834_v33 }
 0x2ba   : > { %v2191_v18 = vpop.f32.mrf.mxu2 }
 0x2bb   : > { %v2501_v60 = vpop.f32.mrf.mxu3  ;;  %v2901_v23 = vmax.f32 %v2869_v62, 0.0  ;;  %v2231_v57 = vadd.f32 %v2191_v18, %v1934_v7  ;;  %v1897_v55 = vpop.f32.mrf.mxu1 }
 0x2bc   : > { %v1935_v31 = vadd.f32 %v1897_v55, %v4693_v26 }
 0x2bd   : > { %2933 = vst.msk [vmem:[%s4746_s20 + $0xd8] sm:$0xff] %vm380_vm2, %v2901_v23  ;;  %v2541_v30 = vadd.f32 %v2501_v60, %v2231_v57 }
 0x2be   : > { %v2798_v58 = vpop.f32.mrf.mxu0 }
 0x2bf   : > { %v2835_v10 = vadd.f32 %v2795_v29, %v2541_v30 }
 0x2c1   : > { %v2870_v2 = vadd.f32 %v4731_v47, %v2835_v10 }
 0x2c2   : > { %v2194_v46 = vpop.f32.mrf.mxu2 }
 0x2c3   : > { %v2504_v3 = vpop.f32.mrf.mxu3  ;;  %v2902_v15 = vmax.f32 %v2870_v2, 0.0  ;;  %v2232_v51 = vadd.f32 %v2194_v46, %v1935_v31  ;;  %v1900_v59 = vpop.f32.mrf.mxu1 }
 0x2c4   : > { %v1936_v42 = vadd.f32 %v1900_v59, %v4707_v13 }
 0x2c5   : > { %2934 = vst.msk [vmem:[%s4746_s20 + $0xe0] sm:$0xff] %vm380_vm2, %v2902_v15  ;;  %v2542_v12 = vadd.f32 %v2504_v3, %v2232_v51 }
 0x2c6   : > { %v2801_v14 = vpop.f32.mrf.mxu0 }
 0x2c7   : > { %v2836_v34 = vadd.f32 %v2798_v58, %v2542_v12 }
 0x2c9   : > { %v2871_v44 = vadd.f32 %v4731_v47, %v2836_v34 }
 0x2ca   : > { %v2197_v32 = vpop.f32.mrf.mxu2 }
 0x2cb   : > { %v2507_v26 = vpop.f32.mrf.mxu3  ;;  %v2903_v49 = vmax.f32 %v2871_v44, 0.0  ;;  %v2233_v22 = vadd.f32 %v2197_v32, %v1936_v42  ;;  %v1903_v6 = vpop.f32.mrf.mxu1 }
 0x2cc   : > { %v1937_v5 = vadd.f32 %v1903_v6, %v4718_v19 }
 0x2cd   : > { %2935 = vst.msk [vmem:[%s4746_s20 + $0xe8] sm:$0xff] %vm380_vm2, %v2903_v49  ;;  %v2543_v11 = vadd.f32 %v2507_v26, %v2233_v22 }
 0x2ce   : > { %v2804_v25 = vpop.f32.mrf.mxu0 }
 0x2cf   : > { %v2837_v52 = vadd.f32 %v2801_v14, %v2543_v11 }
 0x2d1   : > { %v2872_v0 = vadd.f32 %v4731_v47, %v2837_v52 }
 0x2d2   : > { %v2200_v56 = vpop.f32.mrf.mxu2 }
 0x2d3   : > { %v2510_v13 = vpop.f32.mrf.mxu3  ;;  %v2904_v28 = vmax.f32 %v2872_v0, 0.0  ;;  %v2234_v27 = vadd.f32 %v2200_v56, %v1937_v5 }
 0x2d5   : > { %2936 = vst.msk [vmem:[%s4746_s20 + $0xf0] sm:$0xff] %vm380_vm2, %v2904_v28  ;;  %v2544_v38 = vadd.f32 %v2510_v13, %v2234_v27 }
 0x2d7   : > { %v2838_v9 = vadd.f32 %v2804_v25, %v2544_v38 }
 0x2d9   : > { %v2873_v50 = vadd.f32 %v3491_v54, %v2838_v9 }
 0x2db   : > { %v2905_v36 = vmax.f32 %v2873_v50, 0.0 }
 0x2dd   : > { %2937 = vst.msk [vmem:[%s4746_s20 + $0xf8] sm:$0xff] %vm380_vm2, %v2905_v36 }
 0x2de PF: > { %s13_s14 = sadd.s32 1, %s3514_s14   ;;  %s5162_s12 = smov %s3510_s13 }
 0x2df   : > { %p10_p5 = scmp.ge.s32.totalorder %s13_s14, 4   ;;  %s5163_s13 = smov %s5165_s15 }
 0x2e1   :  { %12 = sbr.rel (!%p10_p5) target bundleno = 2 (0x2), region = 73 }

</bundles_post_ra>
